<compile_context>
chip_gen: v7x
topology: tpu7x:2x2x1
jax: 0.10.0
libtpu: 0.0.40
codegen_flags: <defaults>
</compile_context>

<pallas_src>
import jax
import jax.numpy as jnp
from jax.experimental import pallas as pl
from jax.experimental.pallas import tpu as pltpu

F = 257    # native feature dim (Linear(257, 257))
FP = 384   # lane-padded feature dim used for weights / intermediates (3 x 128)


def _dsrn_kernel(enh_ref, noi_ref, we1_ref, wn1_ref, wcat_ref, bcat_ref,
                 out_e_ref, out_n_ref):
    enh = enh_ref[...]                                   # (tm, F)
    noi = noi_ref[...]                                   # (tm, F)

    # Stage 1: liner_enhanced1 / liner_noise1 (no bias) + ReLU.
    # Weights are pre-transposed and zero-padded to (F, FP); K=257 is padded
    # internally by the MXU.  Padded output columns are exactly zero.
    e1 = jnp.maximum(
        jnp.dot(enh, we1_ref[...], preferred_element_type=jnp.float32), 0.0)
    n1 = jnp.maximum(
        jnp.dot(noi, wn1_ref[...], preferred_element_type=jnp.float32), 0.0)
    s = e1 + n1                                          # (tm, FP), cols F..FP-1 == 0

    # Stage 2 (fused): [liner_add1_enh | liner_add1_noise] in one matmul.
    r = jnp.dot(s, wcat_ref[...],
                preferred_element_type=jnp.float32) + bcat_ref[...]   # (tm, 2*FP)

    # Residual adds + native-width stores (masked vst on the last vreg is free
    # here: MXU / HBM dominate, not the store slot).
    out_e_ref[...] = (r[:, :F] + enh).astype(out_e_ref.dtype)
    out_n_ref[...] = (r[:, FP:FP + F] + noi).astype(out_n_ref.dtype)


def prepare_params(params):
    """One-time weight prep: transpose to (in, out), zero-pad to lane-dense
    shapes, and fuse the two stage-2 layers.  Cache the result across calls."""
    we1 = jnp.zeros((F, FP), jnp.float32).at[:, :F].set(params["W_e1"].T)
    wn1 = jnp.zeros((F, FP), jnp.float32).at[:, :F].set(params["W_n1"].T)
    wae = jnp.zeros((FP, FP), jnp.float32).at[:F, :F].set(params["W_ae"].T)
    wan = jnp.zeros((FP, FP), jnp.float32).at[:F, :F].set(params["W_an"].T)
    wcat = jnp.concatenate([wae, wan], axis=1)                      # (FP, 2*FP)
    bae = jnp.zeros((FP,), jnp.float32).at[:F].set(params["b_ae"])
    ban = jnp.zeros((FP,), jnp.float32).at[:F].set(params["b_an"])
    bcat = jnp.concatenate([bae, ban]).reshape(1, 2 * FP)           # (1, 2*FP)
    return {"we1": we1, "wn1": wn1, "wcat": wcat, "bcat": bcat}


def _round_up(x, m):
    return ((x + m - 1) // m) * m


def _pick_tm(M, tm_max=512):
    """Row tile: multiple of 8 (sublane), <= tm_max, and >= 2 grid steps
    whenever M allows so v7x's second TensorCore gets work."""
    if M <= 8:
        return M                       # full-dim row block is always legal
    tm = min(tm_max, _round_up(-(-M // 2), 8))
    return max(8, tm)


def dsrn_forward(enhanced, noise, prepared, *, tm=None):
    """enhanced, noise: (B, T, F) float32.  prepared: from prepare_params().
    Returns (enhanced_pre, noise_pre), both (B, T, F)."""
    B, T, Fdim = enhanced.shape
    assert Fdim == F and noise.shape == enhanced.shape
    M = B * T
    if tm is None:
        tm = _pick_tm(M)
    grid = (pl.cdiv(M, tm),)           # partial last block handled by Pallas

    e2 = enhanced.reshape(M, F)        # contiguous reshape: no copy
    n2 = noise.reshape(M, F)

    row_spec = pl.BlockSpec((tm, F), lambda i: (i, 0))           # native width
    w1_spec = pl.BlockSpec((F, FP), lambda i: (0, 0))            # grid-invariant
    wcat_spec = pl.BlockSpec((FP, 2 * FP), lambda i: (0, 0))
    bcat_spec = pl.BlockSpec((1, 2 * FP), lambda i: (0, 0))

    # 2 stage-1 matmuls (K=F, N=FP) + 1 fused stage-2 matmul (K=FP, N=2*FP).
    flops = 4 * M * FP * (F + FP)
    bytes_accessed = 4 * (4 * M * F          # 2 inputs + 2 outputs, native width
                          + 2 * F * FP       # W_e1, W_n1
                          + FP * 2 * FP      # fused [W_ae | W_an]
                          + 2 * FP)          # fused bias
    cost = pl.CostEstimate(flops=flops, transcendentals=0,
                           bytes_accessed=bytes_accessed)

    out_e, out_n = pl.pallas_call(
        _dsrn_kernel,
        out_shape=(jax.ShapeDtypeStruct((M, F), jnp.float32),
                   jax.ShapeDtypeStruct((M, F), jnp.float32)),
        grid_spec=pltpu.PrefetchScalarGridSpec(
            num_scalar_prefetch=0,
            grid=grid,
            in_specs=[row_spec, row_spec,     # enhanced tile, noise tile
                      w1_spec, w1_spec,       # W_e1^T, W_n1^T (lane-padded)
                      wcat_spec,              # [W_ae^T | W_an^T]
                      bcat_spec],             # [b_ae | b_an]
            out_specs=[row_spec, row_spec],
        ),
        compiler_params=pltpu.CompilerParams(
            dimension_semantics=("parallel",),
            vmem_limit_bytes=32 * 1024 * 1024),
        cost_estimate=cost,
    )(e2, n2, prepared["we1"], prepared["wn1"], prepared["wcat"],
      prepared["bcat"])

    return out_e.reshape(B, T, F), out_n.reshape(B, T, F)


def init_params(key):
    """Deterministic parameter init mirroring the module's layer shapes."""
    ks = jax.random.split(key, 6)
    scale = 1.0 / jnp.sqrt(jnp.float32(F))
    return {
        "W_e1": jax.random.uniform(ks[0], (F, F), jnp.float32, -scale, scale),
        "W_n1": jax.random.uniform(ks[1], (F, F), jnp.float32, -scale, scale),
        "W_ae": jax.random.uniform(ks[2], (F, F), jnp.float32, -scale, scale),
        "W_an": jax.random.uniform(ks[3], (F, F), jnp.float32, -scale, scale),
        "b_ae": jax.random.uniform(ks[4], (F,), jnp.float32, -scale, scale),
        "b_an": jax.random.uniform(ks[5], (F,), jnp.float32, -scale, scale),
    }


def dsrn_forward_ref(enhanced, noise, params):
    """Pure-JAX reference with identical semantics (for verification)."""
    e1 = jnp.maximum(enhanced @ params["W_e1"].T, 0.0)
    n1 = jnp.maximum(noise @ params["W_n1"].T, 0.0)
    s = e1 + n1
    enh_res = s @ params["W_ae"].T + params["b_ae"]
    noi_res = s @ params["W_an"].T + params["b_an"]
    return enh_res + enhanced, noi_res + noise


if __name__ == "__main__":
    key = jax.random.PRNGKey(0)
    k_p, k_e, k_n = jax.random.split(key, 3)

    B, T = 2, 8  # small shapes; M = 16 rows of F = 257 features
    params = init_params(k_p)
    prepared = prepare_params(params)          # one-time weight prep (cached)
    enhanced = jax.random.normal(k_e, (B, T, F), jnp.float32)
    noise = jax.random.normal(k_n, (B, T, F), jnp.float32)

    fwd = jax.jit(dsrn_forward)
    out_e, out_n = fwd(enhanced, noise, prepared)
    out_e = jax.block_until_ready(out_e)
    out_n = jax.block_until_ready(out_n)

    ref_e, ref_n = dsrn_forward_ref(enhanced, noise, params)
    # Both kernel and reference use DEFAULT matmul precision (bf16-rounded MXU
    # operands, f32 accumulation), so differences are accumulation-order only.
    assert jnp.allclose(out_e, ref_e, atol=1e-3, rtol=1e-3)
    assert jnp.allclose(out_n, ref_n, atol=1e-3, rtol=1e-3)

    print("KERNEL_OK")
</pallas_src>

<mosaic_0001>
module attributes {stable_mosaic.version = 11 : i64} {
  func.func @_dsrn_kernel(%arg0: i32, %arg1: memref<8x257xf32, #tpu.memory_space<vmem>>, %arg2: memref<8x257xf32, #tpu.memory_space<vmem>>, %arg3: memref<257x384xf32, #tpu.memory_space<vmem>>, %arg4: memref<257x384xf32, #tpu.memory_space<vmem>>, %arg5: memref<384x768xf32, #tpu.memory_space<vmem>>, %arg6: memref<1x768xf32, #tpu.memory_space<vmem>>, %arg7: memref<8x257xf32, #tpu.memory_space<vmem>>, %arg8: memref<8x257xf32, #tpu.memory_space<vmem>>) attributes {dimension_semantics = [#tpu.dimension_semantics<parallel>], iteration_bounds = array<i64: 2>, scalar_prefetch = 0 : i64, scratch_operands = 0 : i64, tpu.core_type = #tpu.core_type<tc>, window_params = [{transform_indices = @transform_0, window_bounds = array<i64: 8, 257>}, {transform_indices = @transform_1, window_bounds = array<i64: 8, 257>}, {pipeline_mode = #tpu.pipeline_mode<synchronous>, transform_indices = @transform_2, window_bounds = array<i64: 257, 384>}, {pipeline_mode = #tpu.pipeline_mode<synchronous>, transform_indices = @transform_3, window_bounds = array<i64: 257, 384>}, {pipeline_mode = #tpu.pipeline_mode<synchronous>, transform_indices = @transform_4, window_bounds = array<i64: 384, 768>}, {pipeline_mode = #tpu.pipeline_mode<synchronous>, transform_indices = @transform_5, window_bounds = array<i64: 1, 768>}, {transform_indices = @transform_6, window_bounds = array<i64: 8, 257>}, {transform_indices = @transform_7, window_bounds = array<i64: 8, 257>}]} {
    %c0 = arith.constant 0 : index
    %c0_0 = arith.constant 0 : index
    %0 = vector.load %arg1[%c0, %c0_0] : memref<8x257xf32, #tpu.memory_space<vmem>>, vector<8x257xf32>
    %c0_1 = arith.constant 0 : index
    %c0_2 = arith.constant 0 : index
    %1 = vector.load %arg2[%c0_1, %c0_2] : memref<8x257xf32, #tpu.memory_space<vmem>>, vector<8x257xf32>
    %c0_3 = arith.constant 0 : index
    %c0_4 = arith.constant 0 : index
    %2 = vector.load %arg3[%c0_3, %c0_4] : memref<257x384xf32, #tpu.memory_space<vmem>>, vector<257x384xf32>
    %cst = arith.constant dense<0.000000e+00> : vector<8x384xf32>
    %3 = tpu.matmul %0, %2, %cst {dimension_numbers = #tpu.dot_dimension_numbers<[1], [0], [0], [1], [0, 0, 1, 1], [], []>} : vector<8x257xf32>, vector<257x384xf32>, vector<8x384xf32> -> vector<8x384xf32>
    %cst_5 = arith.constant 0.000000e+00 : f32
    %4 = vector.broadcast %cst_5 : f32 to vector<8x384xf32>
    %5 = arith.maximumf %3, %4 : vector<8x384xf32>
    %c0_6 = arith.constant 0 : index
    %c0_7 = arith.constant 0 : index
    %6 = vector.load %arg4[%c0_6, %c0_7] : memref<257x384xf32, #tpu.memory_space<vmem>>, vector<257x384xf32>
    %cst_8 = arith.constant dense<0.000000e+00> : vector<8x384xf32>
    %7 = tpu.matmul %1, %6, %cst_8 {dimension_numbers = #tpu.dot_dimension_numbers<[1], [0], [0], [1], [0, 0, 1, 1], [], []>} : vector<8x257xf32>, vector<257x384xf32>, vector<8x384xf32> -> vector<8x384xf32>
    %cst_9 = arith.constant 0.000000e+00 : f32
    %8 = vector.broadcast %cst_9 : f32 to vector<8x384xf32>
    %9 = arith.maximumf %7, %8 : vector<8x384xf32>
    %10 = arith.addf %5, %9 : vector<8x384xf32>
    %c0_10 = arith.constant 0 : index
    %c0_11 = arith.constant 0 : index
    %11 = vector.load %arg5[%c0_10, %c0_11] : memref<384x768xf32, #tpu.memory_space<vmem>>, vector<384x768xf32>
    %cst_12 = arith.constant dense<0.000000e+00> : vector<8x768xf32>
    %12 = tpu.matmul %10, %11, %cst_12 {dimension_numbers = #tpu.dot_dimension_numbers<[1], [0], [0], [1], [0, 0, 1, 1], [], []>} : vector<8x384xf32>, vector<384x768xf32>, vector<8x768xf32> -> vector<8x768xf32>
    %c0_13 = arith.constant 0 : index
    %c0_14 = arith.constant 0 : index
    %13 = vector.load %arg6[%c0_13, %c0_14] : memref<1x768xf32, #tpu.memory_space<vmem>>, vector<1x768xf32>
    %14 = vector.broadcast %13 : vector<1x768xf32> to vector<8x768xf32>
    %15 = arith.addf %12, %14 : vector<8x768xf32>
    %16 = vector.extract_strided_slice %15 {offsets = [0, 0], sizes = [8, 257], strides = [1, 1]} : vector<8x768xf32> to vector<8x257xf32>
    %17 = arith.addf %16, %0 : vector<8x257xf32>
    %c0_15 = arith.constant 0 : index
    %c0_16 = arith.constant 0 : index
    %18 = vector.load %arg7[%c0_15, %c0_16] : memref<8x257xf32, #tpu.memory_space<vmem>>, vector<8x257xf32>
    tpu.vector_store %arg7[%c0_15, %c0_16], %17 {strides = array<i32>} : memref<8x257xf32, #tpu.memory_space<vmem>>, vector<8x257xf32>,
    %19 = vector.extract_strided_slice %15 {offsets = [0, 384], sizes = [8, 257], strides = [1, 1]} : vector<8x768xf32> to vector<8x257xf32>
    %20 = arith.addf %19, %1 : vector<8x257xf32>
    %c0_17 = arith.constant 0 : index
    %c0_18 = arith.constant 0 : index
    %21 = vector.load %arg8[%c0_17, %c0_18] : memref<8x257xf32, #tpu.memory_space<vmem>>, vector<8x257xf32>
    tpu.vector_store %arg8[%c0_17, %c0_18], %20 {strides = array<i32>} : memref<8x257xf32, #tpu.memory_space<vmem>>, vector<8x257xf32>,
    return
  }
  func.func @transform_0(%arg0: i32) -> (i32, i32) {
    %c0_i32 = arith.constant 0 : i32
    %c0_i32_0 = arith.constant 0 : i32
    return %arg0, %c0_i32 : i32, i32
  }
  func.func @transform_1(%arg0: i32) -> (i32, i32) {
    %c0_i32 = arith.constant 0 : i32
    %c0_i32_0 = arith.constant 0 : i32
    return %arg0, %c0_i32 : i32, i32
  }
  func.func @transform_2(%arg0: i32) -> (i32, i32) {
    %c0_i32 = arith.constant 0 : i32
    %c0_i32_0 = arith.constant 0 : i32
    %c0_i32_1 = arith.constant 0 : i32
    return %c0_i32, %c0_i32_0 : i32, i32
  }
  func.func @transform_3(%arg0: i32) -> (i32, i32) {
    %c0_i32 = arith.constant 0 : i32
    %c0_i32_0 = arith.constant 0 : i32
    %c0_i32_1 = arith.constant 0 : i32
    return %c0_i32, %c0_i32_0 : i32, i32
  }
  func.func @transform_4(%arg0: i32) -> (i32, i32) {
    %c0_i32 = arith.constant 0 : i32
    %c0_i32_0 = arith.constant 0 : i32
    %c0_i32_1 = arith.constant 0 : i32
    return %c0_i32, %c0_i32_0 : i32, i32
  }
  func.func @transform_5(%arg0: i32) -> (i32, i32) {
    %c0_i32 = arith.constant 0 : i32
    %c0_i32_0 = arith.constant 0 : i32
    %c0_i32_1 = arith.constant 0 : i32
    return %c0_i32, %c0_i32_0 : i32, i32
  }
  func.func @transform_6(%arg0: i32) -> (i32, i32) {
    %c0_i32 = arith.constant 0 : i32
    %c0_i32_0 = arith.constant 0 : i32
    return %arg0, %c0_i32 : i32, i32
  }
  func.func @transform_7(%arg0: i32) -> (i32, i32) {
    %c0_i32 = arith.constant 0 : i32
    %c0_i32_0 = arith.constant 0 : i32
    return %arg0, %c0_i32 : i32, i32
  }
}

</mosaic_0001>

<bundles_post_ra>
// kernel: dsrn_forward.1
= control target key start
LH: loop header
LB: loop body
LE: loop exit
PB: predicated region body
PF: predicated region fallthrough
CT: control target
= control target key end

     0   :  { %s3692_s0 = inlined_call_operand.hbm [shape: f32[16,257], index: 0, kind: input, shape index: {}]   ;;  %s3693_s1 = inlined_call_operand.hbm [shape: f32[16,257], index: 1, kind: input, shape index: {}]   ;;  %s3694_s2 = inlined_call_operand.hbm [shape: f32[257,384], index: 2, kind: input, shape index: {}]   ;;  %s3695_s3 = inlined_call_operand.hbm [shape: f32[257,384], index: 3, kind: input, shape index: {}]   ;;  %s3696_s4 = inlined_call_operand.hbm [shape: f32[384,768], index: 4, kind: input, shape index: {}]   ;;  %s3697_s5 = inlined_call_operand.hbm [shape: f32[1,768], index: 5, kind: input, shape index: {}]   ;;  %s3698_s6 = inlined_call_operand.hbm [shape: f32[16,257], index: 6, kind: output, shape index: {0}]   ;;  %s3699_s7 = inlined_call_operand.hbm [shape: f32[16,257], index: 7, kind: output, shape index: {1}]  }
   0x1   :  { %3705 = sst [smem:[#allocation23_spill]] %s3692_s0 }
   0x2   :  { %3706 = sst [smem:[#allocation24_spill]] %s3694_s2 }
   0x3   :  { %13 = vsyncpa [#allocation3], 0 }
   0x4   :  { %15 = vsyncpa [#allocation3 + $0x1], 0 }
   0x5   :  { %16 = vsyncpa [#allocation6], 0 }
   0x6   :  { %18 = vsyncpa [#allocation6 + $0x1], 0 }
   0x7   :  { %19 = vsyncpa [#allocation9], 0 }
   0x8   :  { %20 = vsyncpa [#allocation12], 0 }
   0x9   :  { %21 = vsyncpa [#allocation4], 0 }
   0xa   :  { %23 = vsyncpa [#allocation4 + $0x1], 0 }
   0xb   :  { %24 = vsyncpa [#allocation15], 0 }
   0xc   :  { %26 = vsyncpa [#allocation15 + $0x1], 0  ;;  %s3224_s24 = smov 0   ;;  %s3226_s25 = smov 0  }
   0xd   :  { %s3228_s26 = smov 0   ;;  %s3230_s27 = smov 0  }
   0xe LB: > { %s3170_s28 = smov [#allocation7]   ;;  %s3245_s30 = sadd.s32 4294967295, %s3168_s27   ;;  %s3168_s27 = sphi %s3230_s27, %s3733_s27   ;;  %s3164_s26 = sphi %s3228_s26, %s3732_s26   ;;  %s3160_s25 = sphi %s3226_s25, %s3731_s25   ;;  %s3156_s24 = sphi %s3224_s24, %s3730_s24  }
   0xf   : > { %s237_s29 = sshll.u32 %s3170_s28, 4  ;;  %p2159_p0 = scmp.ge.s32.totalorder %s3168_s27, 1  ;;  %s3250_s29 = int_to_ptr.vmem [resolvable:$true] %s237_s29 }
  0x10   : > { %p3700_p1 = scmp.eq.s32.totalorder %s3245_s30, 0  ;;  %p225_p2 = scmp.lt.s32.totalorder %s3168_s27, 3 }
  0x11   : > { %s3171_s9 = smov [#allocation8]   ;;  %s3172_s12 = smov [#allocation10]  }
  0x12   : > { %p3252_p3 = pnand %p2159_p0, %p225_p2  ;;  %s250_s10 = sshll.u32 %s3171_s9, 4  ;;  %s3265_s10 = int_to_ptr.vmem [resolvable:$true] %s250_s10 }
  0x13   : > { %s263_s13 = sshll.u32 %s3172_s12, 4  ;;  %s3709_s2 = sld [smem:[#allocation24_spill]]  ;;  %s3267_s13 = int_to_ptr.vmem [resolvable:$true] %s263_s13 }
  0x14   : > { %s3707_s8 = scalar_select %p3252_p3, 1, 0 }
  0x15   : > { %p2797_p5 = pneg %p3252_p3 }
  0x17   : > { %p3261_p6 = pnand %p2797_p5, %p3700_p1 }
  0x19   : > { %s2882_s16 = scalar_lea.hbm %s3709_s2, 12672  ;;  %p3277_p8 = pneg %p3261_p6 }
  0x1a   : > { %p2883_p7 = scmp.ne.s32.totalorder %s3709_s2, %s2882_s16  ;;  %p2889_p11 = scmp.lt.u32.totalorder %s2882_s16, %s3709_s2 }
  0x1c   : > { %p2885_p9 = pnand %p3277_p8, %p2883_p7 }
  0x1e   : > { %p2886_p10 = pneg %p2885_p9 }
  0x20   : > { %p2891_p12 = pnand %p2889_p11, %p2886_p10 }
  0x22   : > { %2894 = shalt.err (!%p2891_p12)
}
  0x23   : > { %s2895_s22 = scalar_lea.vmem %s3250_s29, 12672  ;;  %p2903_p5 = scmp.lt.s32.totalorder %s3250_s29, %s3250_s29 }
  0x24   : > { %p2896_p13 = scmp.ne.s32.totalorder %s3250_s29, %s2895_s22  ;;  %p2904_p4 = scmp.lt.s32.totalorder %s2895_s22, %s2895_s22 }
  0x26   : > { %p2898_p0 = pnand %p2896_p13, %p3277_p8  ;;  %p2905_p7 = por %p2904_p4, %p2903_p5 }
  0x28   : > { %p2899_p2 = pneg %p2898_p0 }
  0x2a   : > { %p2906_p9 = pnand %p2905_p7, %p2899_p2 }
  0x2c   : > { %2909 = shalt.err (!%p2906_p9)
}
  0x2d   : > { %s3173_s23 = smov 384   ;;  %s3174_s28 = smov 24  }
  0x2e   : > { %2800 = dma.hbm_to_vmem [thread:$0]  (!%p3261_p6), %s3709_s2, 12672, %s3250_s29, [#allocation6], %s3173_s23, %s3173_s23, %s3174_s28  }
  0x2f   : > { %s2910_s16 = scalar_lea.hbm %s3695_s3, 12672 }
  0x30   : > { %p2911_p4 = scmp.ne.s32.totalorder %s3695_s3, %s2910_s16  ;;  %p2917_p12 = scmp.lt.u32.totalorder %s2910_s16, %s3695_s3 }
  0x32   : > { %p2913_p10 = pnand %p2911_p4, %p3277_p8 }
  0x34   : > { %p2914_p11 = pneg %p2913_p10 }
  0x36   : > { %p2919_p13 = pnand %p2917_p12, %p2914_p11 }
  0x38   : > { %2922 = shalt.err (!%p2919_p13)
}
  0x39   : > { %s2923_s29 = scalar_lea.vmem %s3265_s10, 12672  ;;  %p2931_p7 = scmp.lt.s32.totalorder %s3265_s10, %s3265_s10 }
  0x3a   : > { %p2924_p0 = scmp.ne.s32.totalorder %s3265_s10, %s2923_s29  ;;  %p2932_p9 = scmp.lt.s32.totalorder %s2923_s29, %s2923_s29 }
  0x3c   : > { %p2926_p2 = pnand %p2924_p0, %p3277_p8  ;;  %p2933_p4 = por %p2932_p9, %p2931_p7 }
  0x3e   : > { %p2927_p5 = pneg %p2926_p2 }
  0x40   : > { %p2934_p10 = pnand %p2933_p4, %p2927_p5 }
  0x42   : > { %2937 = shalt.err (!%p2934_p10)
}
  0x43   : > { %2803 = dma.hbm_to_vmem [thread:$0]  (!%p3261_p6), %s3695_s3, 12672, %s3265_s10, [#allocation9], %s3173_s23, %s3173_s23, %s3174_s28  }
  0x44   : > { %s2938_s15 = scalar_lea.hbm %s3696_s4, 36864 }
  0x45   : > { %p2939_p11 = scmp.ne.s32.totalorder %s3696_s4, %s2938_s15  ;;  %p2945_p0 = scmp.lt.u32.totalorder %s2938_s15, %s3696_s4 }
  0x47   : > { %p2941_p12 = pnand %p2939_p11, %p3277_p8 }
  0x49   : > { %p2942_p13 = pneg %p2941_p12 }
  0x4b   : > { %p2947_p2 = pnand %p2945_p0, %p2942_p13 }
  0x4d   : > { %2950 = shalt.err (!%p2947_p2)
}
  0x4e   : > { %s2951_s10 = scalar_lea.vmem %s3267_s13, 36864  ;;  %p2959_p4 = scmp.lt.s32.totalorder %s3267_s13, %s3267_s13 }
  0x4f   : > { %p2952_p5 = scmp.ne.s32.totalorder %s3267_s13, %s2951_s10  ;;  %p2960_p10 = scmp.lt.s32.totalorder %s2951_s10, %s2951_s10 }
  0x51   : > { %p2954_p7 = pnand %p2952_p5, %p3277_p8  ;;  %p2961_p11 = por %p2960_p10, %p2959_p4 }
  0x53   : > { %p2955_p9 = pneg %p2954_p7 }
  0x55   : > { %p2962_p12 = pnand %p2961_p11, %p2955_p9 }
  0x57   : > { %2965 = shalt.err (!%p2962_p12)
}
  0x58   : > { %s3175_s23 = smov 768   ;;  %s3176_s28 = smov 48  }
  0x59   : > { %2806 = dma.hbm_to_vmem [thread:$0]  (!%p3261_p6), %s3696_s4, 36864, %s3267_s13, [#allocation9], %s3175_s23, %s3175_s23, %s3176_s28  }
  0x5a   : > { %s3177_s22 = smov [#allocation11]   ;;  %s2966_s15 = scalar_lea.hbm %s3697_s5, 96 }
  0x5b   : > { %s277_s9 = sshll.u32 %s3177_s22, 4  ;;  %p2967_p13 = scmp.ne.s32.totalorder %s3697_s5, %s2966_s15  ;;  %s278_s9 = int_to_ptr.vmem [resolvable:$true] %s277_s9 }
  0x5c   : > { %p2973_p5 = scmp.lt.u32.totalorder %s2966_s15, %s3697_s5 }
  0x5d   : > { %p2969_p0 = pnand %p2967_p13, %p3277_p8 }
  0x5f   : > { %p2970_p2 = pneg %p2969_p0 }
  0x61   : > { %p2975_p7 = pnand %p2973_p5, %p2970_p2 }
  0x63   : > { %2978 = shalt.err (!%p2975_p7)
}
  0x64   : > { %s2979_s13 = scalar_lea.vmem %s278_s9, 96  ;;  %p2987_p11 = scmp.lt.s32.totalorder %s278_s9, %s278_s9 }
  0x65   : > { %p2980_p9 = scmp.ne.s32.totalorder %s278_s9, %s2979_s13  ;;  %p2988_p12 = scmp.lt.s32.totalorder %s2979_s13, %s2979_s13 }
  0x67   : > { %p2982_p4 = pnand %p2980_p9, %p3277_p8  ;;  %p2989_p1 = por %p2988_p12, %p2987_p11 }
  0x69   : > { %p2983_p10 = pneg %p2982_p4 }
  0x6b   : > { %p2990_p3 = pnand %p2989_p1, %p2983_p10 }
  0x6d   : > { %2993 = shalt.err (!%p2990_p3)
}
  0x6e   : > { %2809 = dma.hbm_to_vmem [thread:$0]  (!%p3261_p6), %s3697_s5, 96, %s278_s9, [#allocation12]  }
  0x6f   : > { %s2158_s19 = sadd.s32 4294967294, %s3168_s27   ;;  %s3364_s11 = sadd.s32 1, %s3168_s27  }
  0x70   : > { %s36_s28 = ssub.s32 %s3168_s27, %s3364_s11  ;;  %s39_s21 = sadd.s32 1, %s3164_s26 }
  0x71   : > { %p37_p1 = scmp.eq.s32.totalorder %s36_s28, 0  ;;  %p46_p3 = scmp.ne.s32.totalorder %s3164_s26, %s3160_s25 }
  0x72   : > { %p47_p8 = scmp.eq.s32.totalorder %s3168_s27, 0  ;;  %p52_p13 = scmp.ne.s32.totalorder %s3160_s25, %s3156_s24 }
  0x73   : > { %s3375_s29 = scalar_select %p37_p1, %s3164_s26, %s39_s21  }
  0x74   : > { %p48_p0 = por %p47_p8, %p46_p3  ;;  %p3711_p2 = scmp.eq.s32.totalorder %s3245_s30, 0 }
  0x75   : > { %p186_p6 = scmp.eq.s32.totalorder %s3245_s30, 1  ;;  %p192_p7 = scmp.eq.s32.totalorder %s2158_s19, 1 }
  0x76   : > { %p3379_p5 = por %p3711_p2, %p52_p13  ;;  %p2828_p9 = scmp.lt.s32.totalorder %s3168_s27, 2 }
  0x77   : > { %s288_s9 = sand.u32 1, %s3164_s26   ;;  %p3386_p4 = por %p186_p6, %p46_p3 }
  0x78   : > { %s3712_s22 = scalar_select %p3379_p5, 1, 0 }
  0x79   : > { %s3713_s12 = scalar_select %p3386_p4, 1, 0 }
  0x7a   : > { %p3390_p10 = por %p192_p7, %p52_p13  ;;  %s3394_s15 = smul.u32 24, %s288_s9 }
  0x7b   : > { %s3702_s16 = smul.u32 384, %s3168_s27  ;;  %p3397_p11 = pnand %p2828_p9, %p48_p0 }
  0x7c   : > { %s3714_s14 = scalar_select %p3390_p10, 1, 0 }
  0x7d   : > { %s3716_s0 = sld [smem:[#allocation23_spill]]  ;;  %s292_s23 = scalar_lea.vmem [#allocation2], %s3394_s15 }
  0x7e   : > { %s300_s19 = sshll.u32 %s292_s23, 4  ;;  %s289_s28 = scalar_lea.sflag [#allocation3], %s288_s9  ;;  %s3410_s19 = int_to_ptr.vmem [resolvable:$true] %s300_s19 }
  0x7f   : > { %p2996_p1 = pneg %p3397_p11 }
  0x83   : > { %s3407_s10 = scalar_lea.hbm %s3716_s0, %s3702_s16  ;;  %s2999_s18 = scalar_lea.hbm %s3716_s0, 768 }
  0x84   : > { %s2994_s21 = scalar_lea.hbm %s3407_s10, 384  ;;  %p3000_p13 = scmp.lt.u32.totalorder %s3407_s10, %s3716_s0 }
  0x85   : > { %p2995_p12 = scmp.ne.s32.totalorder %s3407_s10, %s2994_s21  ;;  %p3001_p0 = scmp.lt.u32.totalorder %s2999_s18, %s2994_s21 }
  0x86   : > { %p3003_p6 = scmp.lt.u32.totalorder %s2994_s21, %s3407_s10 }
  0x87   : > { %p2997_p3 = pnand %p2996_p1, %p2995_p12  ;;  %p3002_p2 = por %p3001_p0, %p3000_p13 }
  0x89   : > { %p2998_p8 = pneg %p2997_p3  ;;  %p3004_p7 = por %p3003_p6, %p3002_p2 }
  0x8b   : > { %p3005_p9 = pnand %p3004_p7, %p2998_p8 }
  0x8d   : > { %3008 = shalt.err (!%p3005_p9)
}
  0x8e   : > { %s3009_s9 = scalar_lea.vmem %s3410_s19, 384  ;;  %s3178_s23 = smov [#allocation2]  }
  0x8f   : > { %p3010_p12 = scmp.ne.s32.totalorder %s3410_s19, %s3009_s9  ;;  %s3014_s20 = sshll.u32 %s3178_s23, 4  ;;  %s3015_s20 = int_to_ptr.vmem [resolvable:$false] %s3014_s20 }
  0x90   : > { %s3016_s2 = scalar_lea.vmem %s3015_s20, 768  ;;  %p3017_p4 = scmp.lt.s32.totalorder %s3410_s19, %s3015_s20 }
  0x91   : > { %p3012_p3 = pnand %p3010_p12, %p2996_p1  ;;  %p3018_p13 = scmp.lt.s32.totalorder %s3016_s2, %s3009_s9 }
  0x93   : > { %p3013_p10 = pneg %p3012_p3  ;;  %p3019_p0 = por %p3018_p13, %p3017_p4 }
  0x95   : > { %p3020_p2 = pnand %p3019_p0, %p3013_p10 }
  0x97   : > { %3023 = shalt.err (!%p3020_p2)
}
  0x98   : > { %2813 = dma.hbm_to_vmem [thread:$0]  (!%p3397_p11), %s3407_s10, 384, %s3410_s19, %s289_s28  }
  0x99   : > { %s3717_s16 = smul.u32 384, %s3168_s27  ;;  %s311_s9 = scalar_lea.vmem [#allocation5], %s3394_s15 }
  0x9a   : > { %s319_s23 = sshll.u32 %s311_s9, 4  ;;  %s3718_s20 = sand.u32 1, %s3168_s27   ;;  %s320_s23 = int_to_ptr.vmem [resolvable:$true] %s319_s23 }
  0x9b   : > { %s3442_s13 = scalar_lea.hbm %s3693_s1, %s3717_s16  ;;  %s308_s2 = scalar_lea.sflag [#allocation6], %s3718_s20 }
  0x9c   : > { %s3024_s0 = scalar_lea.hbm %s3442_s13, 384  ;;  %s3029_s28 = scalar_lea.hbm %s3693_s1, 768 }
  0x9d   : > { %p3025_p4 = scmp.ne.s32.totalorder %s3442_s13, %s3024_s0  ;;  %p3030_p6 = scmp.lt.u32.totalorder %s3442_s13, %s3693_s1 }
  0x9e   : > { %p3031_p7 = scmp.lt.u32.totalorder %s3029_s28, %s3024_s0  ;;  %p3033_p12 = scmp.lt.u32.totalorder %s3024_s0, %s3442_s13 }
  0x9f   : > { %p3027_p10 = pnand %p3025_p4, %p2996_p1 }
  0xa0   : > { %p3032_p9 = por %p3031_p7, %p3030_p6 }
  0xa1   : > { %p3028_p8 = pneg %p3027_p10 }
  0xa2   : > { %p3034_p3 = por %p3033_p12, %p3032_p9 }
  0xa4   : > { %p3035_p13 = pnand %p3034_p3, %p3028_p8 }
  0xa6   : > { %3038 = shalt.err (!%p3035_p13)
}
  0xa7   : > { %s3039_s15 = scalar_lea.vmem %s320_s23, 384  ;;  %s3179_s21 = smov [#allocation5]  }
  0xa8   : > { %p3040_p0 = scmp.ne.s32.totalorder %s320_s23, %s3039_s15  ;;  %s3044_s9 = sshll.u32 %s3179_s21, 4  ;;  %s3045_s9 = int_to_ptr.vmem [resolvable:$false] %s3044_s9 }
  0xa9   : > { %s3046_s20 = scalar_lea.vmem %s3045_s9, 768  ;;  %p3047_p10 = scmp.lt.s32.totalorder %s320_s23, %s3045_s9 }
  0xaa   : > { %p3042_p2 = pnand %p3040_p0, %p2996_p1  ;;  %p3048_p5 = scmp.lt.s32.totalorder %s3046_s20, %s3039_s15 }
  0xac   : > { %p3043_p4 = pneg %p3042_p2  ;;  %p3049_p6 = por %p3048_p5, %p3047_p10 }
  0xae   : > { %p3050_p7 = pnand %p3049_p6, %p3043_p4 }
  0xb0   : > { %3053 = shalt.err (!%p3050_p7)
}
  0xb1   : > { %2816 = dma.hbm_to_vmem [thread:$0]  (!%p3397_p11), %s3442_s13, 384, %s320_s23, %s308_s2  }
  0xb2   : > { %p3719_p8 = scmp.ne.s32.totalorder %s3707_s8, 0 }
  0xb3   : > { %s3469_s0 = sand.u32 (!%p3719_p8), 1, %s3160_s25   ;;  %p3720_p5 = scmp.ne.s32.totalorder (!%p3719_p8), %s3712_s22, 0 }
  0xb4   : > { %328 = sbr.rel (%p3719_p8) target bundleno = 943 (0x3af), region = 44  ;;  %s331_s19 = scalar_lea.sflag (!%p3719_p8), [#allocation3], %s3469_s0 }
  0xb5   : > { %s3472_s10 = smul.u32 (!%p3719_p8), 24, %s3469_s0 }
  0xb7   : > { %s3476_s28 = scalar_lea.vmem (!%p3719_p8), [#allocation2], %s3472_s10 }
  0xbb   : > { %3127 = dma.done.wait (%p3720_p5), %s331_s19, 384  }
  0xbc   : > { %3129 = vsyncadd (%p3720_p5), %s331_s19, 4294966912  ;;  %s339_s8 = sand.u32 1, %s3245_s30   ;;  %s3484_s13 = scalar_lea.vmem [#allocation5], %s3472_s10 }
  0xbd   : > { %s340_s17 = scalar_lea.sflag [#allocation6], %s339_s8 }
  0xbe   : > { %3131 = dma.done.wait (%p3720_p5), %s340_s17, 384  }
  0xbf   : > { %3133 = vsyncadd (%p3720_p5), %s340_s17, 4294966912  ;;  %p3721_p11 = scmp.eq.s32.totalorder %s3245_s30, 0 }
  0xc1   : > { %3135 = dma.done.wait (%p3721_p11), [#allocation6], 12672   ;;  %p3722_p1 = pmov %p3721_p11 }
  0xc3   : > { %3137 = vsyncadd (%p3722_p1), [#allocation6], 4294954624  ;;  %p3723_p9 = pmov %p3722_p1 }
  0xc4   : > { %p3724_p12 = pmov %p3722_p1 }
  0xc5   : > { %3139 = dma.done.wait (%p3723_p9), [#allocation9], 49536  }
  0xc6   : > { %3141 = vsyncadd (%p3724_p12), [#allocation9], 4294917760  ;;  %p3725_p3 = pmov %p3722_p1 }
  0xc7   : > { %p3726_p13 = pmov %p3722_p1 }
  0xc8   : > { %3143 = dma.done.wait (%p3725_p3), [#allocation12], 96  }
  0xc9   : > { %3145 = vsyncadd (%p3726_p13), [#allocation12], 4294967200  ;;  %v3180_v0 = vmov 0.0   ;;  %v407_v1 = vld [vmem:[#allocation7 + $0x8] sm:$0xff]  ;;  %v410_v2 = vld [vmem:[#allocation7 + $0x20] sm:$0xff]  ;;  %vm509_vm0 = vcmask 1040384  }
  0xca   : > { %654 = vmatprep.mubr.f32.mxu0 %v3180_v0  ;;  %v406_v3 = vld [vmem:[#allocation7] sm:$0xff]  ;;  %v2270_v4 = vpack.c.bf16 %v410_v2, %v407_v1  ;;  %v409_v5 = vld [vmem:[#allocation7 + $0x18] sm:$0xff]  ;;  %v416_v7 = vld [vmem:[#allocation7 + $0x50] sm:$0xff]  ;;  %vm505_vm1 = vcmask 7168   ;;  %vm3181_vm2 = vmmov 0   ;;  %s2771_s22 = smul.u32 384, %s3245_s30 }
  0xcb   : > { %v413_v6 = vld [vmem:[#allocation7 + $0x38] sm:$0xff]  ;;  %v2272_v8 = vpack.c.bf16 %v409_v5, %v406_v3  ;;  %v412_v10 = vld [vmem:[#allocation7 + $0x30] sm:$0xff]  ;;  %v415_v11 = vld [vmem:[#allocation7 + $0x48] sm:$0xff]  ;;  %s392_s23 = scalar_lea.vmem [#allocation13], %s3472_s10  ;;  %s3608_s21 = scalar_lea.vmem [#allocation14], %s3472_s10 }
  0xcc   : > { %v2274_v9 = vpack.c.bf16 %v416_v7, %v413_v6  ;;  %v419_v12 = vld [vmem:[#allocation7 + $0x68] sm:$0xff]  ;;  %2271 = vmatprep.subr.bf16.mxu1 %v2270_v4  ;;  %v422_v13 = vld [vmem:[#allocation7 + $0x80] sm:$0xff]  ;;  %v2276_v14 = vpack.c.bf16 %v415_v11, %v412_v10  ;;  %v421_v17 = vld [vmem:[#allocation7 + $0x78] sm:$0xff]  ;;  %s1981_s2 = sshll.u32 %s392_s23, 4  ;;  %s3602_s15 = scalar_lea.hbm %s3698_s6, %s2771_s22  ;;  %s3604_s2 = int_to_ptr.vmem [resolvable:$true] %s1981_s2 }
  0xcd   : > { %2273 = vmatpush1.bf16.msra.mxu1 %v2272_v8  ;;  %v2278_v15 = vpack.c.bf16 %v422_v13, %v419_v12  ;;  %v418_v16 = vld [vmem:[#allocation7 + $0x60] sm:$0xff]  ;;  %v425_v18 = vld [vmem:[#allocation7 + $0x98] sm:$0xff]  ;;  %v428_v19 = vld [vmem:[#allocation7 + $0xb0] sm:$0xff]  ;;  %s1962_s9 = scalar_lea.sflag [#allocation4], %s3469_s0  ;;  %s3054_s20 = scalar_lea.vmem %s3604_s2, 384 }
  0xce   : > { %2275 = vmatprep.subr.bf16.mxu1 %v2274_v9  ;;  %v2280_v20 = vpack.c.bf16 %v421_v17, %v418_v16  ;;  %v2282_v21 = vpack.c.bf16 %v428_v19, %v425_v18  ;;  %v424_v22 = vld [vmem:[#allocation7 + $0x90] sm:$0xff]  ;;  %v427_v23 = vld [vmem:[#allocation7 + $0xa8] sm:$0xff]  ;;  %v434_v25 = vld [vmem:[#allocation7 + $0xe0] sm:$0xff]  ;;  %p3055_p0 = scmp.ne.s32.totalorder %s3604_s2, %s3054_s20  ;;  %p3727_p2 = scmp.ne.s32.totalorder %s3713_s12, 0 }
  0xcf   : > { %v431_v24 = vld [vmem:[#allocation7 + $0xc8] sm:$0xff]  ;;  %v2284_v26 = vpack.c.bf16 %v427_v23, %v424_v22  ;;  %v430_v28 = vld [vmem:[#allocation7 + $0xc0] sm:$0xff]  ;;  %v433_v29 = vld [vmem:[#allocation7 + $0xd8] sm:$0xff]  ;;  %s3182_s19 = smov [#allocation13]  }
  0xd0   : > { %v2286_v27 = vpack.c.bf16 %v434_v25, %v431_v24  ;;  %v437_v30 = vld [vmem:[#allocation7 + $0xf8] sm:$0xff]  ;;  %v440_v31 = vld [vmem:[#allocation7 + $0x110] sm:$0xff]  ;;  %v2288_v32 = vpack.c.bf16 %v433_v29, %v430_v28  ;;  %v439_v35 = vld [vmem:[#allocation7 + $0x108] sm:$0xff]  ;;  %p3056_p4 = pnand %p3055_p0, %p3727_p2 }
  0xd1   : > { %2277 = vmatpush1.bf16.msra.mxu1 %v2276_v14  ;;  %v2290_v33 = vpack.c.bf16 %v440_v31, %v437_v30  ;;  %v436_v34 = vld [vmem:[#allocation7 + $0xf0] sm:$0xff]  ;;  %v443_v36 = vld [vmem:[#allocation7 + $0x128] sm:$0xff]  ;;  %v446_v37 = vld [vmem:[#allocation7 + $0x140] sm:$0xff] }
  0xd2   : > { %2279 = vmatprep.subr.bf16.mxu1 %v2278_v15  ;;  %v503_v38 = vld [vmem:[#allocation7 + $0x308] sm:$0x1]  ;;  %v502_v39 = vld [vmem:[#allocation7 + $0x300] sm:$0x1]  ;;  %v2292_v40 = vpack.c.bf16 %v439_v35, %v436_v34  ;;  %v2294_v42 = vpack.c.bf16 %v446_v37, %v443_v36  ;;  %v445_v44 = vld [vmem:[#allocation7 + $0x138] sm:$0xff]  ;;  %p3057_p10 = pneg %p3056_p4 }
  0xd3   : > { %2172 = vmatprep.subr.msk.mxu0 %vm509_vm0, %v503_v38  ;;  %v402_v41 = vld [vmem:[%s3476_s28 + $0x10] sm:$0xff]  ;;  %v442_v43 = vld [vmem:[#allocation7 + $0x120] sm:$0xff]  ;;  %v449_v46 = vld [vmem:[#allocation7 + $0x158] sm:$0xff] }
  0xd4   : > { %2173 = vmatpush1.msk.msra.mxu0 %vm509_vm0, %v502_v39  ;;  %v504_v45 = vld [vmem:[#allocation7 + $0x310] sm:$0x1]  ;;  %v901_v48 = vld [vmem:[#allocation8 + $0x308] sm:$0x1]  ;;  %v900_v49 = vld [vmem:[#allocation8 + $0x300] sm:$0x1]  ;;  %v2296_v52 = vpack.c.bf16 %v445_v44, %v442_v43 }
  0xd5   : > { %2281 = vmatpush1.bf16.msra.mxu1 %v2280_v20  ;;  %2174 = vmatmul.mubr.msk.f32.vlgmr.msra.gmra.mrb[0].mxu0 %vm505_vm1, %v402_v41  ;;  %v452_v47 = vld [vmem:[#allocation7 + $0x170] sm:$0xff]  ;;  %v3512_v50 = vld [vmem:[%s3476_s28 + $0x8] sm:$0xff]  ;;  %v3519_v61 = vld [vmem:[%s3484_s13 + $0x10] sm:$0xff] }
  0xd6   : > { %2283 = vmatprep.subr.bf16.mxu1 %v2282_v21  ;;  %2260 = vmatprep.subr.mxu0 %v3180_v0  ;;  %v854_v51 = vld [vmem:[#allocation8 + $0x190] sm:$0xff]  ;;  %v448_v53 = vld [vmem:[#allocation7 + $0x150] sm:$0xff]  ;;  %v857_v54 = vld [vmem:[#allocation8 + $0x1a8] sm:$0xff]  ;;  %v2298_v55 = vpack.c.bf16 %v452_v47, %v449_v46 }
  0xd7   : > { %2262 = vmatprep.mubr.msk.f32.mxu0 %vm3181_vm2, %v3180_v0  ;;  %2261 = vmatpush3.msk.msra.mxu0 %vm509_vm0, %v504_v45  ;;  %v451_v56 = vld [vmem:[#allocation7 + $0x168] sm:$0xff]  ;;  %v2430_v58 = vpack.c.bf16 %v857_v54, %v854_v51  ;;  %v458_v60 = vld [vmem:[#allocation7 + $0x1a0] sm:$0xff]  ;;  %v860_v1 = vld [vmem:[#allocation8 + $0x1c0] sm:$0xff] }
  0xd8   : > { %2177 = vmatprep.subr.msk.mxu0 %vm509_vm0, %v901_v48  ;;  %v455_v57 = vld [vmem:[#allocation7 + $0x188] sm:$0xff]  ;;  %583 = vmatprep.mubr.f32.mxu1 %v3512_v50  ;;  %v809_v62 = vld [vmem:[#allocation8 + $0x28] sm:$0xff]  ;;  %v863_v2 = vld [vmem:[#allocation8 + $0x1d8] sm:$0xff]  ;;  %v2300_v3 = vpack.c.bf16 %v451_v56, %v448_v53 }
  0xd9   : > { %2285 = vmatpush1.bf16.msra.mxu1 %v2284_v26  ;;  %2263 = vmatmul.mubr.msk.f32.vlgmr.msra.gmra.mrb[2].mxu0 %vm505_vm1, %v402_v41  ;;  %v806_v59 = vld [vmem:[#allocation8 + $0x10] sm:$0xff]  ;;  %v2434_v4 = vpack.c.bf16 %v863_v2, %v860_v1  ;;  %v812_v5 = vld [vmem:[#allocation8 + $0x40] sm:$0xff]  ;;  %v815_v6 = vld [vmem:[#allocation8 + $0x58] sm:$0xff]  ;;  %v2302_v7 = vpack.c.bf16 %v458_v60, %v455_v57 }
  0xda   : > { %2287 = vmatprep.subr.bf16.mxu1 %v2286_v27  ;;  %2178 = vmatpush1.msk.msra.mxu0 %vm509_vm0, %v900_v49  ;;  %v2432_v63 = vpack.c.bf16 %v809_v62, %v806_v59  ;;  %v454_v8 = vld [vmem:[#allocation7 + $0x180] sm:$0xff]  ;;  %v457_v9 = vld [vmem:[#allocation7 + $0x198] sm:$0xff]  ;;  %v866_v10 = vld [vmem:[#allocation8 + $0x1f0] sm:$0xff]  ;;  %v2436_v13 = vpack.c.bf16 %v815_v6, %v812_v5 }
  0xdb   : > { %1050 = vmatprep.mubr.f32.mxu0 %v3180_v0  ;;  %2431 = vmatprep.subr.bf16.mxu0 %v2430_v58  ;;  %v461_v11 = vld [vmem:[#allocation7 + $0x1b8] sm:$0xff]  ;;  %v464_v12 = vld [vmem:[#allocation7 + $0x1d0] sm:$0xff]  ;;  %v869_v14 = vld [vmem:[#allocation8 + $0x208] sm:$0xff]  ;;  %v2304_v18 = vpack.c.bf16 %v457_v9, %v454_v8 }
  0xdc   : > { %v2438_v15 = vpack.c.bf16 %v869_v14, %v866_v10  ;;  %v818_v16 = vld [vmem:[#allocation8 + $0x70] sm:$0xff]  ;;  %v821_v17 = vld [vmem:[#allocation8 + $0x88] sm:$0xff]  ;;  %v872_v19 = vld [vmem:[#allocation8 + $0x220] sm:$0xff]  ;;  %v2306_v21 = vpack.c.bf16 %v464_v12, %v461_v11 }
  0xdd   : > { %2289 = vmatpush1.bf16.msra.mxu1 %v2288_v32  ;;  %2179 = vmatmul.mubr.msk.f32.vlgmr.msra.gmra.mrb[4].mxu0 %vm505_vm1, %v3519_v61  ;;  %v875_v20 = vld [vmem:[#allocation8 + $0x238] sm:$0xff]  ;;  %v463_v23 = vld [vmem:[#allocation7 + $0x1c8] sm:$0xff]  ;;  %v470_v25 = vld [vmem:[#allocation7 + $0x200] sm:$0xff]  ;;  %v2440_v26 = vpack.c.bf16 %v821_v17, %v818_v16 }
  0xde   : > { %2291 = vmatprep.subr.bf16.mxu1 %v2290_v33  ;;  %2433 = vmatpush3.bf16.msra.mxu0 %v2432_v63  ;;  %v460_v22 = vld [vmem:[#allocation7 + $0x1b0] sm:$0xff]  ;;  %v467_v24 = vld [vmem:[#allocation7 + $0x1e8] sm:$0xff]  ;;  %v2442_v27 = vpack.c.bf16 %v875_v20, %v872_v19  ;;  %v824_v28 = vld [vmem:[#allocation8 + $0xa0] sm:$0xff] }
  0xdf   : > { %2435 = vmatprep.subr.bf16.mxu0 %v2434_v4  ;;  %v827_v29 = vld [vmem:[#allocation8 + $0xb8] sm:$0xff]  ;;  %v2308_v30 = vpack.c.bf16 %v463_v23, %v460_v22  ;;  %v878_v31 = vld [vmem:[#allocation8 + $0x250] sm:$0xff]  ;;  %v881_v32 = vld [vmem:[#allocation8 + $0x268] sm:$0xff]  ;;  %v2310_v33 = vpack.c.bf16 %v470_v25, %v467_v24 }
  0xe0   : > { %v466_v34 = vld [vmem:[#allocation7 + $0x1e0] sm:$0xff]  ;;  %v469_v35 = vld [vmem:[#allocation7 + $0x1f8] sm:$0xff]  ;;  %v476_v37 = vld [vmem:[#allocation7 + $0x230] sm:$0xff]  ;;  %v2444_v38 = vpack.c.bf16 %v827_v29, %v824_v28  ;;  %v2446_v39 = vpack.c.bf16 %v881_v32, %v878_v31 }
  0xe1   : > { %2293 = vmatpush1.bf16.msra.mxu1 %v2292_v40  ;;  %v473_v36 = vld [vmem:[#allocation7 + $0x218] sm:$0xff]  ;;  %v830_v40 = vld [vmem:[#allocation8 + $0xd0] sm:$0xff]  ;;  %v833_v41 = vld [vmem:[#allocation8 + $0xe8] sm:$0xff] }
  0xe2   : > { %2295 = vmatprep.subr.bf16.mxu1 %v2294_v42  ;;  %2437 = vmatpush3.bf16.msra.mxu0 %v2436_v13  ;;  %v2312_v42 = vpack.c.bf16 %v469_v35, %v466_v34  ;;  %v884_v43 = vld [vmem:[#allocation8 + $0x280] sm:$0xff]  ;;  %v887_v44 = vld [vmem:[#allocation8 + $0x298] sm:$0xff]  ;;  %v2314_v45 = vpack.c.bf16 %v476_v37, %v473_v36  ;;  %v475_v47 = vld [vmem:[#allocation7 + $0x228] sm:$0xff]  ;;  %v2448_v51 = vpack.c.bf16 %v833_v41, %v830_v40 }
  0xe3   : > { %2439 = vmatprep.subr.bf16.mxu0 %v2438_v15  ;;  %v472_v46 = vld [vmem:[#allocation7 + $0x210] sm:$0xff]  ;;  %v479_v48 = vld [vmem:[#allocation7 + $0x248] sm:$0xff]  ;;  %v482_v49 = vld [vmem:[#allocation7 + $0x260] sm:$0xff] }
  0xe4   : > { %v836_v53 = vld [vmem:[#allocation8 + $0x100] sm:$0xff]  ;;  %v839_v54 = vld [vmem:[#allocation8 + $0x118] sm:$0xff]  ;;  %v890_v56 = vld [vmem:[#allocation8 + $0x2b0] sm:$0xff]  ;;  %v2318_v58 = vpack.c.bf16 %v482_v49, %v479_v48 }
  0xe5   : > { %2297 = vmatpush1.bf16.msra.mxu1 %v2296_v52  ;;  %v2450_v52 = vpack.c.bf16 %v887_v44, %v884_v43  ;;  %v893_v57 = vld [vmem:[#allocation8 + $0x2c8] sm:$0xff]  ;;  %v481_v60 = vld [vmem:[#allocation7 + $0x258] sm:$0xff]  ;;  %v488_v1 = vld [vmem:[#allocation7 + $0x290] sm:$0xff]  ;;  %v2452_v2 = vpack.c.bf16 %v839_v54, %v836_v53 }
  0xe6   : > { %2299 = vmatprep.subr.bf16.mxu1 %v2298_v55  ;;  %2441 = vmatpush3.bf16.msra.mxu0 %v2440_v26  ;;  %v2316_v55 = vpack.c.bf16 %v475_v47, %v472_v46  ;;  %v478_v59 = vld [vmem:[#allocation7 + $0x240] sm:$0xff]  ;;  %v3525_v62 = vld [vmem:[%s3484_s13 + $0x8] sm:$0xff]  ;;  %v842_v4 = vld [vmem:[#allocation8 + $0x130] sm:$0xff] }
  0xe7   : > { %2443 = vmatprep.subr.bf16.mxu0 %v2442_v27  ;;  %v485_v63 = vld [vmem:[#allocation7 + $0x278] sm:$0xff]  ;;  %1121 = vmatprep.mubr.f32.mxu0 %v3525_v62  ;;  %v845_v5 = vld [vmem:[#allocation8 + $0x148] sm:$0xff]  ;;  %v2320_v6 = vpack.c.bf16 %v481_v60, %v478_v59  ;;  %v899_v8 = vld [vmem:[#allocation8 + $0x2f8] sm:$0xff] }
  0xe8   : > { %v2322_v9 = vpack.c.bf16 %v488_v1, %v485_v63  ;;  %v484_v10 = vld [vmem:[#allocation7 + $0x270] sm:$0xff]  ;;  %v487_v11 = vld [vmem:[#allocation7 + $0x288] sm:$0xff]  ;;  %v494_v13 = vld [vmem:[#allocation7 + $0x2c0] sm:$0xff]  ;;  %v2456_v14 = vpack.c.bf16 %v845_v5, %v842_v4 }
  0xe9   : > { %2301 = vmatpush1.bf16.msra.mxu1 %v2300_v3  ;;  %v2454_v3 = vpack.c.bf16 %v893_v57, %v890_v56  ;;  %v491_v12 = vld [vmem:[#allocation7 + $0x2a8] sm:$0xff]  ;;  %v848_v16 = vld [vmem:[#allocation8 + $0x160] sm:$0xff]  ;;  %v851_v17 = vld [vmem:[#allocation8 + $0x178] sm:$0xff] }
  0xea   : > { %2303 = vmatprep.subr.bf16.mxu1 %v2302_v7  ;;  %2445 = vmatpush3.bf16.msra.mxu0 %v2444_v38  ;;  %v896_v7 = vld [vmem:[#allocation8 + $0x2e0] sm:$0xff]  ;;  %v2326_v19 = vpack.c.bf16 %v494_v13, %v491_v12  ;;  %v490_v20 = vld [vmem:[#allocation7 + $0x2a0] sm:$0xff]  ;;  %v500_v23 = vld [vmem:[#allocation7 + $0x2f0] sm:$0xff]  ;;  %v2460_v24 = vpack.c.bf16 %v851_v17, %v848_v16 }
  0xeb   : > { %2447 = vmatprep.subr.bf16.mxu0 %v2446_v39  ;;  %v2458_v15 = vpack.c.bf16 %v899_v8, %v896_v7  ;;  %v497_v22 = vld [vmem:[#allocation7 + $0x2d8] sm:$0xff]  ;;  %v496_v27 = vld [vmem:[#allocation7 + $0x2d0] sm:$0xff]  ;;  %v499_v28 = vld [vmem:[#allocation7 + $0x2e8] sm:$0xff] }
  0xec   : > { %v2330_v26 = vpack.c.bf16 %v500_v23, %v497_v22  ;;  %v456_v29 = vld [vmem:[#allocation7 + $0x190] sm:$0xff]  ;;  %v902_v32 = vld [vmem:[#allocation8 + $0x310] sm:$0x1]  ;;  %v462_v37 = vld [vmem:[#allocation7 + $0x1c0] sm:$0xff] }
  0xed   : > { %2305 = vmatpush1.bf16.msra.mxu1 %v2304_v18  ;;  %v2324_v18 = vpack.c.bf16 %v487_v11, %v484_v10  ;;  %v3529_v31 = vld [vmem:[%s3484_s13] sm:$0xff]  ;;  %v465_v38 = vld [vmem:[#allocation7 + $0x1d8] sm:$0xff]  ;;  %v486_v63 = vld [vmem:[#allocation7 + $0x280] sm:$0xff] }
  0xee   : > { %2307 = vmatprep.subr.bf16.mxu1 %v2306_v21  ;;  %2449 = vmatpush3.bf16.msra.mxu0 %v2448_v51  ;;  %v493_v21 = vld [vmem:[#allocation7 + $0x2b8] sm:$0xff]  ;;  %v408_v35 = vld [vmem:[#allocation7 + $0x10] sm:$0xff]  ;;  %v411_v36 = vld [vmem:[#allocation7 + $0x28] sm:$0xff]  ;;  %v2338_v41 = vpack.c.bf16 %v465_v38, %v462_v37 }
  0xef   : > { %2451 = vmatprep.subr.bf16.mxu0 %v2450_v52  ;;  %v2328_v25 = vpack.c.bf16 %v493_v21, %v490_v20  ;;  %v3537_v39 = vld [vmem:[%s3476_s28] sm:$0xff]  ;;  %v2336_v40 = vpack.c.bf16 %v411_v36, %v408_v35  ;;  %v468_v44 = vld [vmem:[#allocation7 + $0x1f0] sm:$0xff]  ;;  %v423_v49 = vld [vmem:[#allocation7 + $0x88] sm:$0xff] }
  0xf0   : > { %v417_v43 = vld [vmem:[#allocation7 + $0x58] sm:$0xff]  ;;  %v420_v48 = vld [vmem:[#allocation7 + $0x70] sm:$0xff]  ;;  %v474_v51 = vld [vmem:[#allocation7 + $0x220] sm:$0xff] }
  0xf1   : > { %2309 = vmatpush1.bf16.msra.mxu1 %v2308_v30  ;;  %v459_v30 = vld [vmem:[#allocation7 + $0x1a8] sm:$0xff]  ;;  %v477_v52 = vld [vmem:[#allocation7 + $0x238] sm:$0xff]  ;;  %v2344_v53 = vpack.c.bf16 %v423_v49, %v420_v48  ;;  %v480_v56 = vld [vmem:[#allocation7 + $0x250] sm:$0xff] }
  0xf2   : > { %2311 = vmatprep.subr.bf16.mxu1 %v2310_v33  ;;  %2453 = vmatpush3.bf16.msra.mxu0 %v2452_v2  ;;  %v2332_v33 = vpack.c.bf16 %v499_v28, %v496_v27  ;;  %v2334_v34 = vpack.c.bf16 %v459_v30, %v456_v29  ;;  %v2346_v54 = vpack.c.bf16 %v477_v52, %v474_v51  ;;  %v483_v57 = vld [vmem:[#allocation7 + $0x268] sm:$0xff]  ;;  %v432_v60 = vld [vmem:[#allocation7 + $0xd0] sm:$0xff]  ;;  %v489_v1 = vld [vmem:[#allocation7 + $0x298] sm:$0xff] }
  0xf3   : > { %2455 = vmatprep.subr.bf16.mxu0 %v2454_v3  ;;  %v2350_v59 = vpack.c.bf16 %v483_v57, %v480_v56  ;;  %v2354_v3 = vpack.c.bf16 %v489_v1, %v486_v63  ;;  %v438_v4 = vld [vmem:[#allocation7 + $0x100] sm:$0xff]  ;;  %v441_v5 = vld [vmem:[#allocation7 + $0x118] sm:$0xff]  ;;  %v495_v7 = vld [vmem:[#allocation7 + $0x2c8] sm:$0xff] }
  0xf4   : > { %v2356_v8 = vpack.c.bf16 %v441_v5, %v438_v4  ;;  %v444_v10 = vld [vmem:[#allocation7 + $0x130] sm:$0xff]  ;;  %v447_v11 = vld [vmem:[#allocation7 + $0x148] sm:$0xff]  ;;  %v498_v12 = vld [vmem:[#allocation7 + $0x2e0] sm:$0xff] }
  0xf5   : > { %2313 = vmatpush1.bf16.msra.mxu1 %v2312_v42  ;;  %v414_v42 = vld [vmem:[#allocation7 + $0x40] sm:$0xff]  ;;  %v501_v13 = vld [vmem:[#allocation7 + $0x2f8] sm:$0xff]  ;;  %v807_v23 = vld [vmem:[#allocation8 + $0x18] sm:$0xff] }
  0xf6   : > { %2315 = vmatprep.subr.bf16.mxu1 %v2314_v45  ;;  %2457 = vmatpush3.bf16.msra.mxu0 %v2456_v14  ;;  %v471_v45 = vld [vmem:[#allocation7 + $0x208] sm:$0xff]  ;;  %v2340_v46 = vpack.c.bf16 %v417_v43, %v414_v42  ;;  %v2360_v14 = vpack.c.bf16 %v447_v11, %v444_v10  ;;  %v450_v16 = vld [vmem:[#allocation7 + $0x160] sm:$0xff]  ;;  %v453_v17 = vld [vmem:[#allocation7 + $0x178] sm:$0xff] }
  0xf7   : > { %2459 = vmatprep.subr.bf16.mxu0 %v2458_v15  ;;  %v2342_v47 = vpack.c.bf16 %v471_v45, %v468_v44  ;;  %v2362_v15 = vpack.c.bf16 %v501_v13, %v498_v12  ;;  %v2364_v20 = vpack.c.bf16 %v453_v17, %v450_v16  ;;  %v804_v22 = vld [vmem:[#allocation8] sm:$0xff]  ;;  %v810_v28 = vld [vmem:[#allocation8 + $0x30] sm:$0xff]  ;;  %v813_v29 = vld [vmem:[#allocation8 + $0x48] sm:$0xff] }
  0xf8   : > { %v817_v30 = vld [vmem:[#allocation8 + $0x68] sm:$0xff]  ;;  %v816_v35 = vld [vmem:[#allocation8 + $0x60] sm:$0xff]  ;;  %v819_v36 = vld [vmem:[#allocation8 + $0x78] sm:$0xff] }
  0xf9   : > { %2317 = vmatpush1.bf16.msra.mxu1 %v2316_v55  ;;  %v426_v55 = vld [vmem:[#allocation7 + $0xa0] sm:$0xff]  ;;  %v823_v37 = vld [vmem:[#allocation8 + $0x98] sm:$0xff]  ;;  %v826_v38 = vld [vmem:[#allocation8 + $0xb0] sm:$0xff] }
  0xfa   : > { %2319 = vmatprep.subr.bf16.mxu1 %v2318_v58  ;;  %2461 = vmatpush3.bf16.msra.mxu0 %v2460_v24  ;;  %v811_v24 = vld [vmem:[#allocation8 + $0x38] sm:$0xff]  ;;  %v822_v42 = vld [vmem:[#allocation8 + $0x90] sm:$0xff]  ;;  %v825_v43 = vld [vmem:[#allocation8 + $0xa8] sm:$0xff] }
  0xfb   : > { %2265 = vmatprep.subr.mxu0 %v3180_v0  ;;  %v829_v44 = vld [vmem:[#allocation8 + $0xc8] sm:$0xff]  ;;  %v832_v45 = vld [vmem:[#allocation8 + $0xe0] sm:$0xff]  ;;  %v835_v48 = vld [vmem:[#allocation8 + $0xf8] sm:$0xff] }
  0xfc   : > { %v838_v49 = vld [vmem:[#allocation8 + $0x110] sm:$0xff]  ;;  %v853_v4 = vld [vmem:[#allocation8 + $0x188] sm:$0xff]  ;;  %v856_v5 = vld [vmem:[#allocation8 + $0x1a0] sm:$0xff] }
  0xfd   : > { %2321 = vmatpush1.bf16.msra.mxu1 %v2320_v6  ;;  %1122 = vmatmul.mubr.f32.vlgmr.msra.gmra.mrb[6].mxu0 %v3529_v31  ;;  %v492_v6 = vld [vmem:[#allocation7 + $0x2b0] sm:$0xff]  ;;  %v2386_v52 = vpack.c.bf16 %v838_v49, %v835_v48  ;;  %v862_v11 = vld [vmem:[#allocation8 + $0x1d0] sm:$0xff]  ;;  %v865_v16 = vld [vmem:[#allocation8 + $0x1e8] sm:$0xff] }
  0xfe   : > { %2323 = vmatprep.subr.bf16.mxu1 %v2322_v9  ;;  %2266 = vmatpush3.msk.msra.mxu0 %vm509_vm0, %v902_v32  ;;  %v2358_v9 = vpack.c.bf16 %v495_v7, %v492_v6  ;;  %v820_v32 = vld [vmem:[#allocation8 + $0x80] sm:$0xff]  ;;  %v2398_v7 = vpack.c.bf16 %v856_v5, %v853_v4  ;;  %v859_v10 = vld [vmem:[#allocation8 + $0x1b8] sm:$0xff]  ;;  %v1222_v4 = vld [vmem:[#allocation10 + $0x98] sm:$0xff] }
  0xff   : > { %2267 = vmatprep.mubr.msk.f32.mxu0 %vm3181_vm2, %v3180_v0  ;;  %v2402_v13 = vpack.c.bf16 %v862_v11, %v859_v10  ;;  %v868_v17 = vld [vmem:[#allocation8 + $0x200] sm:$0xff]  ;;  %v1218_v5 = vld [vmem:[#allocation10 + $0x78] sm:$0xff]  ;;  %v1217_v11 = vld [vmem:[#allocation10 + $0x70] sm:$0xff] }
 0x101   : > { %2325 = vmatpush1.bf16.msra.mxu1 %v2324_v18  ;;  %2268 = vmatmul.mubr.msk.f32.vlgmr.msra.gmra.mrb[8].mxu0 %vm505_vm1, %v3519_v61  ;;  %v429_v61 = vld [vmem:[#allocation7 + $0xb8] sm:$0xff]  ;;  %v805_v18 = vld [vmem:[#allocation8 + $0x8] sm:$0xff] }
 0x102   : > { %2327 = vmatprep.subr.bf16.mxu1 %v2326_v19  ;;  %v2348_v58 = vpack.c.bf16 %v429_v61, %v426_v55  ;;  %v808_v19 = vld [vmem:[#allocation8 + $0x20] sm:$0xff]  ;;  %v841_v55 = vld [vmem:[#allocation8 + $0x128] sm:$0xff] }
 0x103   : > { %v2366_v21 = vpack.c.bf16 %v808_v19, %v805_v18  ;;  %v844_v61 = vld [vmem:[#allocation8 + $0x140] sm:$0xff]  ;;  %v2406_v19 = vpack.c.bf16 %v868_v17, %v865_v16  ;;  %v1230_v16 = vld [vmem:[#allocation10 + $0xd8] sm:$0xff] }
 0x104   : > { %v2390_v57 = vpack.c.bf16 %v844_v61, %v841_v55  ;;  %v1210_v55 = vld [vmem:[#allocation10 + $0x38] sm:$0xff]  ;;  %v1236_v17 = vld [vmem:[#allocation10 + $0x108] sm:$0xff] }
 0x105   : > { %2329 = vmatpush1.bf16.msra.mxu1 %v2328_v25  ;;  %v814_v25 = vld [vmem:[#allocation8 + $0x50] sm:$0xff] }
 0x106   : > { %2331 = vmatprep.subr.bf16.mxu1 %v2330_v26  ;;  %v2368_v26 = vpack.c.bf16 %v807_v23, %v804_v22  ;;  %v2370_v27 = vpack.c.bf16 %v814_v25, %v811_v24  ;;  %v871_v22 = vld [vmem:[#allocation8 + $0x218] sm:$0xff]  ;;  %v874_v23 = vld [vmem:[#allocation8 + $0x230] sm:$0xff] }
 0x107   : > { %v2410_v25 = vpack.c.bf16 %v874_v23, %v871_v22  ;;  %v1206_v61 = vld [vmem:[#allocation10 + $0x18] sm:$0xff]  ;;  %v1229_v22 = vld [vmem:[#allocation10 + $0xd0] sm:$0xff] }
 0x109   : > { %2333 = vmatpush1.bf16.msra.mxu1 %v2332_v33  ;;  %v2372_v33 = vpack.c.bf16 %v813_v29, %v810_v28  ;;  %v877_v28 = vld [vmem:[#allocation8 + $0x248] sm:$0xff]  ;;  %v880_v29 = vld [vmem:[#allocation8 + $0x260] sm:$0xff] }
 0x10a   : > { %2335 = vmatprep.subr.bf16.mxu1 %v2334_v34  ;;  %v2374_v34 = vpack.c.bf16 %v820_v32, %v817_v30  ;;  %v2414_v32 = vpack.c.bf16 %v880_v29, %v877_v28  ;;  %v1242_v29 = vld [vmem:[#allocation10 + $0x138] sm:$0xff] }
 0x10c   : > { %584 = vmatmul.mubr.f32.vlgmr.msra.gmra.mrb[0].mxu1 %v3537_v39 }
 0x10d   : > { %2337 = vmatpush3.bf16.msra.mxu1 %v2336_v40  ;;  %725 = vmatprep.mubr.f32.mxu1 %v3512_v50  ;;  %v435_v50 = vld [vmem:[#allocation7 + $0xe8] sm:$0xff]  ;;  %v2376_v40 = vpack.c.bf16 %v819_v36, %v816_v35  ;;  %v883_v35 = vld [vmem:[#allocation8 + $0x278] sm:$0xff] }
 0x10e   : > { %2339 = vmatprep.subr.bf16.mxu1 %v2338_v41  ;;  %v2352_v2 = vpack.c.bf16 %v435_v50, %v432_v60  ;;  %v2378_v41 = vpack.c.bf16 %v826_v38, %v823_v37  ;;  %v847_v60 = vld [vmem:[#allocation8 + $0x158] sm:$0xff]  ;;  %v850_v50 = vld [vmem:[#allocation8 + $0x170] sm:$0xff] }
 0x10f   : > { %v2394_v1 = vpack.c.bf16 %v850_v50, %v847_v60  ;;  %v886_v36 = vld [vmem:[#allocation8 + $0x290] sm:$0xff] }
 0x110   : > { %v2418_v38 = vpack.c.bf16 %v886_v36, %v883_v35  ;;  %v1241_v35 = vld [vmem:[#allocation10 + $0x130] sm:$0xff]  ;;  %v1247_v36 = vld [vmem:[#allocation10 + $0x160] sm:$0xff] }
 0x111   : > { %2341 = vmatpush3.bf16.msra.mxu1 %v2340_v46  ;;  %v2382_v46 = vpack.c.bf16 %v832_v45, %v829_v44 }
 0x112   : > { %2343 = vmatprep.subr.bf16.mxu1 %v2342_v47  ;;  %v828_v47 = vld [vmem:[#allocation8 + $0xc0] sm:$0xff] }
 0x115   : > { %2345 = vmatpush3.bf16.msra.mxu1 %v2344_v53  ;;  %v834_v53 = vld [vmem:[#allocation8 + $0xf0] sm:$0xff] }
 0x116   : > { %2347 = vmatprep.subr.bf16.mxu1 %v2346_v54  ;;  %v837_v54 = vld [vmem:[#allocation8 + $0x108] sm:$0xff] }
 0x117   : > { %v2388_v56 = vpack.c.bf16 %v837_v54, %v834_v53  ;;  %v1204_v54 = vld [vmem:[#allocation10 + $0x8] sm:$0xff] }
 0x119   : > { %2349 = vmatpush3.bf16.msra.mxu1 %v2348_v58  ;;  %v840_v58 = vld [vmem:[#allocation8 + $0x120] sm:$0xff] }
 0x11a   : > { %2351 = vmatprep.subr.bf16.mxu1 %v2350_v59  ;;  %v843_v59 = vld [vmem:[#allocation8 + $0x138] sm:$0xff] }
 0x11b   : > { %v2392_v63 = vpack.c.bf16 %v843_v59, %v840_v58  ;;  %v1203_v58 = vld [vmem:[#allocation10] sm:$0xff]  ;;  %v1209_v59 = vld [vmem:[#allocation10 + $0x30] sm:$0xff] }
 0x11c   : > { %v2464_v50 = vpack.c.bf16 %v1209_v59, %v1203_v58  ;;  %v1271_v59 = vld [vmem:[#allocation10 + $0x220] sm:$0xff] }
 0x11d   : > { %2353 = vmatpush3.bf16.msra.mxu1 %v2352_v2  ;;  %v846_v2 = vld [vmem:[#allocation8 + $0x150] sm:$0xff] }
 0x11e   : > { %2355 = vmatprep.subr.bf16.mxu1 %v2354_v3  ;;  %v849_v3 = vld [vmem:[#allocation8 + $0x168] sm:$0xff] }
 0x11f   : > { %v2396_v6 = vpack.c.bf16 %v849_v3, %v846_v2  ;;  %v1216_v3 = vld [vmem:[#allocation10 + $0x68] sm:$0xff] }
 0x121   : > { %2357 = vmatpush3.bf16.msra.mxu1 %v2356_v8  ;;  %v852_v8 = vld [vmem:[#allocation8 + $0x180] sm:$0xff] }
 0x122   : > { %2359 = vmatprep.subr.bf16.mxu1 %v2358_v9  ;;  %v855_v9 = vld [vmem:[#allocation8 + $0x198] sm:$0xff] }
 0x123   : > { %v2400_v12 = vpack.c.bf16 %v855_v9, %v852_v8  ;;  %v1221_v8 = vld [vmem:[#allocation10 + $0x90] sm:$0xff] }
 0x125   : > { %2361 = vmatpush3.bf16.msra.mxu1 %v2360_v14  ;;  %v858_v14 = vld [vmem:[#allocation8 + $0x1b0] sm:$0xff] }
 0x126   : > { %2363 = vmatprep.subr.bf16.mxu1 %v2362_v15  ;;  %v861_v15 = vld [vmem:[#allocation8 + $0x1c8] sm:$0xff] }
 0x127   : > { %v2404_v18 = vpack.c.bf16 %v861_v15, %v858_v14  ;;  %v1234_v15 = vld [vmem:[#allocation10 + $0xf8] sm:$0xff] }
 0x129   : > { %2365 = vmatpush3.bf16.msra.mxu1 %v2364_v20  ;;  %v864_v20 = vld [vmem:[#allocation8 + $0x1e0] sm:$0xff] }
 0x12a   : > { %2367 = vmatprep.subr.bf16.mxu1 %v2366_v21  ;;  %v867_v21 = vld [vmem:[#allocation8 + $0x1f8] sm:$0xff] }
 0x12b   : > { %v2408_v24 = vpack.c.bf16 %v867_v21, %v864_v20  ;;  %v1227_v20 = vld [vmem:[#allocation10 + $0xc0] sm:$0xff]  ;;  %v1233_v21 = vld [vmem:[#allocation10 + $0xf0] sm:$0xff] }
 0x12c   : > { %726 = vmatmul.mubr.f32.vlgmr.msra.gmra.mrb[2].mxu1 %v3537_v39  ;;  %v2380_v39 = vpack.c.bf16 %v825_v43, %v822_v42  ;;  %v889_v42 = vld [vmem:[#allocation8 + $0x2a8] sm:$0xff]  ;;  %v892_v43 = vld [vmem:[#allocation8 + $0x2c0] sm:$0xff]  ;;  %v2472_v23 = vpack.c.bf16 %v1233_v21, %v1227_v20  ;;  %v1295_v20 = vld [vmem:[#allocation10 + $0x2e0] sm:$0xff] }
 0x12d   : > { %2369 = vmatpush1.bf16.msra.mxu1 %v2368_v26  ;;  %979 = vmatprep.mubr.f32.mxu1 %v3525_v62  ;;  %v831_v62 = vld [vmem:[#allocation8 + $0xd8] sm:$0xff]  ;;  %v870_v26 = vld [vmem:[#allocation8 + $0x210] sm:$0xff]  ;;  %v2422_v45 = vpack.c.bf16 %v892_v43, %v889_v42  ;;  %v1260_v42 = vld [vmem:[#allocation10 + $0x1c8] sm:$0xff]  ;;  %v2572_v43 = vpack.c.bf16 %v1247_v36, %v1241_v35 }
 0x12e   : > { %2371 = vmatprep.subr.bf16.mxu1 %v2370_v27  ;;  %v2384_v51 = vpack.c.bf16 %v831_v62, %v828_v47  ;;  %v873_v27 = vld [vmem:[#allocation8 + $0x228] sm:$0xff]  ;;  %v895_v47 = vld [vmem:[#allocation8 + $0x2d8] sm:$0xff]  ;;  %v898_v62 = vld [vmem:[#allocation8 + $0x2f0] sm:$0xff] }
 0x12f   : > { %v2412_v30 = vpack.c.bf16 %v873_v27, %v870_v26  ;;  %v2426_v49 = vpack.c.bf16 %v898_v62, %v895_v47  ;;  %v1246_v26 = vld [vmem:[#allocation10 + $0x158] sm:$0xff]  ;;  %v1259_v62 = vld [vmem:[#allocation10 + $0x1c0] sm:$0xff]  ;;  %v1300_v21 = vld [vmem:[#allocation10 + $0x308] sm:$0xff] }
 0x130   : > { %v1318_v35 = vld [vmem:[#allocation10 + $0x398] sm:$0xff] }
 0x131   : > { %2373 = vmatpush1.bf16.msra.mxu1 %v2372_v33  ;;  %v876_v33 = vld [vmem:[#allocation8 + $0x240] sm:$0xff]  ;;  %v1314_v36 = vld [vmem:[#allocation10 + $0x378] sm:$0xff] }
 0x132   : > { %2375 = vmatprep.subr.bf16.mxu1 %v2374_v34  ;;  %v879_v34 = vld [vmem:[#allocation8 + $0x258] sm:$0xff] }
 0x133   : > { %v2416_v37 = vpack.c.bf16 %v879_v34, %v876_v33  ;;  %v1245_v34 = vld [vmem:[#allocation10 + $0x150] sm:$0xff] }
 0x135   : > { %2377 = vmatpush1.bf16.msra.mxu1 %v2376_v40  ;;  %v882_v40 = vld [vmem:[#allocation8 + $0x270] sm:$0xff] }
 0x136   : > { %2379 = vmatprep.subr.bf16.mxu1 %v2378_v41  ;;  %v885_v41 = vld [vmem:[#allocation8 + $0x288] sm:$0xff] }
 0x137   : > { %v2420_v44 = vpack.c.bf16 %v885_v41, %v882_v40  ;;  %v1254_v40 = vld [vmem:[#allocation10 + $0x198] sm:$0xff] }
 0x138   : > { %v2574_v47 = vpack.c.bf16 %v1260_v42, %v1254_v40  ;;  %v1311_v42 = vld [vmem:[#allocation10 + $0x360] sm:$0xff] }
 0x139   : > { %2381 = vmatpush1.bf16.msra.mxu1 %v2380_v39  ;;  %v888_v39 = vld [vmem:[#allocation8 + $0x2a0] sm:$0xff] }
 0x13a   : > { %2383 = vmatprep.subr.bf16.mxu1 %v2382_v46  ;;  %v891_v46 = vld [vmem:[#allocation8 + $0x2b8] sm:$0xff] }
 0x13b   : > { %v2424_v48 = vpack.c.bf16 %v891_v46, %v888_v39  ;;  %v1257_v39 = vld [vmem:[#allocation10 + $0x1b0] sm:$0xff] }
 0x13c   : > { %v1253_v46 = vld [vmem:[#allocation10 + $0x190] sm:$0xff] }
 0x13d   : > { %2385 = vmatpush1.bf16.msra.mxu1 %v2384_v51  ;;  %v894_v51 = vld [vmem:[#allocation8 + $0x2d0] sm:$0xff] }
 0x13e   : > { %2387 = vmatprep.subr.bf16.mxu1 %v2386_v52  ;;  %v897_v52 = vld [vmem:[#allocation8 + $0x2e8] sm:$0xff] }
 0x13f   : > { %v2428_v53 = vpack.c.bf16 %v897_v52, %v894_v51  ;;  %v1266_v51 = vld [vmem:[#allocation10 + $0x1f8] sm:$0xff]  ;;  %v1272_v52 = vld [vmem:[#allocation10 + $0x228] sm:$0xff] }
 0x140   : > { %v2578_v58 = vpack.c.bf16 %v1272_v52, %v1266_v51 }
 0x141   : > { %2389 = vmatpush1.bf16.msra.mxu1 %v2388_v56  ;;  %v2462_v56 = vpack.c.bf16 %v1210_v55, %v1204_v54  ;;  %v2576_v54 = vpack.c.bf16 %v1259_v62, %v1253_v46  ;;  %v1324_v46 = vld [vmem:[#allocation10 + $0x3c8] sm:$0xff]  ;;  %v1326_v62 = vld [vmem:[#allocation10 + $0x3d8] sm:$0xff] }
 0x142   : > { %2391 = vmatprep.subr.bf16.mxu1 %v2390_v57  ;;  %v1212_v57 = vld [vmem:[#allocation10 + $0x48] sm:$0xff] }
 0x143   : > { %v2558_v60 = vpack.c.bf16 %v1212_v57, %v1206_v61  ;;  %2463 = vmatprep.subr.bf16.mxu0 %v2462_v56  ;;  %v1263_v61 = vld [vmem:[#allocation10 + $0x1e0] sm:$0xff]  ;;  %v1269_v56 = vld [vmem:[#allocation10 + $0x210] sm:$0xff] }
 0x144   : > { %2465 = vmatpush1.bf16.msra.mxu0 %v2464_v50  ;;  %v1265_v57 = vld [vmem:[#allocation10 + $0x1f0] sm:$0xff]  ;;  %v1282_v50 = vld [vmem:[#allocation10 + $0x278] sm:$0xff] }
 0x145   : > { %2393 = vmatpush1.bf16.msra.mxu1 %v2392_v63  ;;  %v1205_v63 = vld [vmem:[#allocation10 + $0x10] sm:$0xff] }
 0x146   : > { %2395 = vmatprep.subr.bf16.mxu1 %v2394_v1  ;;  %v1211_v1 = vld [vmem:[#allocation10 + $0x40] sm:$0xff] }
 0x147   : > { %v2560_v2 = vpack.c.bf16 %v1211_v1, %v1205_v63  ;;  %v1278_v63 = vld [vmem:[#allocation10 + $0x258] sm:$0xff]  ;;  %v1284_v1 = vld [vmem:[#allocation10 + $0x288] sm:$0xff] }
 0x149   : > { %2397 = vmatpush1.bf16.msra.mxu1 %v2396_v6  ;;  %v2466_v6 = vpack.c.bf16 %v1222_v4, %v1216_v3  ;;  %v2580_v3 = vpack.c.bf16 %v1271_v59, %v1265_v57  ;;  %v1336_v57 = vld [vmem:[#allocation10 + $0x428] sm:$0xff]  ;;  %v1338_v59 = vld [vmem:[#allocation10 + $0x438] sm:$0xff] }
 0x14a   : > { %2399 = vmatprep.subr.bf16.mxu1 %v2398_v7  ;;  %v1215_v7 = vld [vmem:[#allocation10 + $0x60] sm:$0xff] }
 0x14b   : > { %v2468_v10 = vpack.c.bf16 %v1221_v8, %v1215_v7  ;;  %2467 = vmatprep.subr.bf16.mxu0 %v2466_v6  ;;  %v1281_v6 = vld [vmem:[#allocation10 + $0x270] sm:$0xff]  ;;  %v2582_v7 = vpack.c.bf16 %v1284_v1, %v1278_v63  ;;  %v1283_v8 = vld [vmem:[#allocation10 + $0x280] sm:$0xff] }
 0x14d   : > { %2401 = vmatpush1.bf16.msra.mxu1 %v2400_v12  ;;  %v1223_v12 = vld [vmem:[#allocation10 + $0xa0] sm:$0xff]  ;;  %2469 = vmatpush1.bf16.msra.mxu0 %v2468_v10  ;;  %v1294_v10 = vld [vmem:[#allocation10 + $0x2d8] sm:$0xff] }
 0x14e   : > { %2403 = vmatprep.subr.bf16.mxu1 %v2402_v13  ;;  %v1228_v13 = vld [vmem:[#allocation10 + $0xc8] sm:$0xff]  ;;  %v2564_v14 = vpack.c.bf16 %v1223_v12, %v1217_v11  ;;  %v1290_v11 = vld [vmem:[#allocation10 + $0x2b8] sm:$0xff] }
 0x14f   : > { %v1296_v12 = vld [vmem:[#allocation10 + $0x2e8] sm:$0xff] }
 0x151   : > { %2405 = vmatpush1.bf16.msra.mxu1 %v2404_v18  ;;  %v2470_v18 = vpack.c.bf16 %v1234_v15, %v1228_v13 }
 0x152   : > { %2407 = vmatprep.subr.bf16.mxu1 %v2406_v19  ;;  %v2566_v19 = vpack.c.bf16 %v1236_v17, %v1230_v16  ;;  %v1287_v16 = vld [vmem:[#allocation10 + $0x2a0] sm:$0xff]  ;;  %v1293_v17 = vld [vmem:[#allocation10 + $0x2d0] sm:$0xff] }
 0x153   : > { %2471 = vmatprep.subr.bf16.mxu0 %v2470_v18  ;;  %v1289_v18 = vld [vmem:[#allocation10 + $0x2b0] sm:$0xff] }
 0x154   : > { %2473 = vmatpush1.bf16.msra.mxu0 %v2472_v23  ;;  %v1302_v23 = vld [vmem:[#allocation10 + $0x318] sm:$0xff] }
 0x155   : > { %2409 = vmatpush1.bf16.msra.mxu1 %v2408_v24  ;;  %v1235_v24 = vld [vmem:[#allocation10 + $0x100] sm:$0xff] }
 0x156   : > { %2411 = vmatprep.subr.bf16.mxu1 %v2410_v25  ;;  %v1240_v25 = vld [vmem:[#allocation10 + $0x128] sm:$0xff]  ;;  %v2568_v27 = vpack.c.bf16 %v1235_v24, %v1229_v22  ;;  %v1306_v22 = vld [vmem:[#allocation10 + $0x338] sm:$0xff] }
 0x157   : > { %v2474_v28 = vpack.c.bf16 %v1246_v26, %v1240_v25  ;;  %v1308_v24 = vld [vmem:[#allocation10 + $0x348] sm:$0xff]  ;;  %v2492_v25 = vpack.c.bf16 %v1293_v17, %v1287_v16  ;;  %v2588_v26 = vpack.c.bf16 %v1295_v20, %v1289_v18  ;;  %v1349_v16 = vld [vmem:[#allocation10 + $0x490] sm:$0xff] }
 0x158   : > { %v1360_v20 = vld [vmem:[#allocation10 + $0x4e8] sm:$0xff] }
 0x159   : > { %2413 = vmatpush1.bf16.msra.mxu1 %v2412_v30  ;;  %v1248_v30 = vld [vmem:[#allocation10 + $0x168] sm:$0xff]  ;;  %2475 = vmatprep.subr.bf16.mxu0 %v2474_v28  ;;  %v1299_v28 = vld [vmem:[#allocation10 + $0x300] sm:$0xff] }
 0x15a   : > { %2415 = vmatprep.subr.bf16.mxu1 %v2414_v32  ;;  %v1239_v32 = vld [vmem:[#allocation10 + $0x120] sm:$0xff]  ;;  %v2570_v33 = vpack.c.bf16 %v1248_v30, %v1242_v29  ;;  %v1305_v29 = vld [vmem:[#allocation10 + $0x330] sm:$0xff] }
 0x15b   : > { %v2476_v41 = vpack.c.bf16 %v1245_v34, %v1239_v32  ;;  %v1301_v30 = vld [vmem:[#allocation10 + $0x310] sm:$0xff]  ;;  %v2590_v32 = vpack.c.bf16 %v1308_v24, %v1302_v23  ;;  %v1312_v34 = vld [vmem:[#allocation10 + $0x368] sm:$0xff] }
 0x15c   : > { %v1368_v23 = vld [vmem:[#allocation10 + $0x528] sm:$0xff] }
 0x15d   : > { %2417 = vmatpush1.bf16.msra.mxu1 %v2416_v37  ;;  %v1252_v37 = vld [vmem:[#allocation10 + $0x188] sm:$0xff]  ;;  %2477 = vmatpush1.bf16.msra.mxu0 %v2476_v41  ;;  %v2498_v41 = vpack.c.bf16 %v1318_v35, %v1312_v34  ;;  %v1367_v34 = vld [vmem:[#allocation10 + $0x520] sm:$0xff] }
 0x15e   : > { %2419 = vmatprep.subr.bf16.mxu1 %v2418_v38  ;;  %v1258_v38 = vld [vmem:[#allocation10 + $0x1b8] sm:$0xff] }
 0x161   : > { %2421 = vmatpush1.bf16.msra.mxu1 %v2420_v44  ;;  %v2478_v44 = vpack.c.bf16 %v1258_v38, %v1252_v37  ;;  %v1320_v37 = vld [vmem:[#allocation10 + $0x3a8] sm:$0xff]  ;;  %v2496_v38 = vpack.c.bf16 %v1305_v29, %v1299_v28  ;;  %v1359_v28 = vld [vmem:[#allocation10 + $0x4e0] sm:$0xff]  ;;  %v1365_v29 = vld [vmem:[#allocation10 + $0x510] sm:$0xff] }
 0x162   : > { %2423 = vmatprep.subr.bf16.mxu1 %v2422_v45  ;;  %v1251_v45 = vld [vmem:[#allocation10 + $0x180] sm:$0xff]  ;;  %v2516_v35 = vpack.c.bf16 %v1365_v29, %v1359_v28 }
 0x163   : > { %2479 = vmatprep.subr.bf16.mxu0 %v2478_v44  ;;  %v1313_v44 = vld [vmem:[#allocation10 + $0x370] sm:$0xff]  ;;  %v1395_v29 = vld [vmem:[#allocation10 + $0x600] sm:$0xff] }
 0x165   : > { %2425 = vmatpush1.bf16.msra.mxu1 %v2424_v48  ;;  %v1264_v48 = vld [vmem:[#allocation10 + $0x1e8] sm:$0xff] }
 0x166   : > { %2427 = vmatprep.subr.bf16.mxu1 %v2426_v49  ;;  %v1270_v49 = vld [vmem:[#allocation10 + $0x218] sm:$0xff] }
 0x167   : > { %v2482_v55 = vpack.c.bf16 %v1270_v49, %v1264_v48  ;;  %v1332_v48 = vld [vmem:[#allocation10 + $0x408] sm:$0xff] }
 0x169   : > { %2429 = vmatpush1.bf16.msra.mxu1 %v2428_v53  ;;  %v2480_v53 = vpack.c.bf16 %v1257_v39, %v1251_v45  ;;  %v2594_v45 = vpack.c.bf16 %v1320_v37, %v1314_v36  ;;  %v1319_v39 = vld [vmem:[#allocation10 + $0x3a0] sm:$0xff] }
 0x16a   : > { %2559 = vmatprep.subr.bf16.mxu1 %v2558_v60  ;;  %v1276_v60 = vld [vmem:[#allocation10 + $0x248] sm:$0xff]  ;;  %v2596_v51 = vpack.c.bf16 %v1319_v39, %v1313_v44  ;;  %v1377_v39 = vld [vmem:[#allocation10 + $0x570] sm:$0xff] }
 0x16b   : > { %2481 = vmatpush1.bf16.msra.mxu0 %v2480_v53  ;;  %v2486_v4 = vpack.c.bf16 %v1282_v50, %v1276_v60  ;;  %v1323_v53 = vld [vmem:[#allocation10 + $0x3c0] sm:$0xff]  ;;  %v1344_v60 = vld [vmem:[#allocation10 + $0x468] sm:$0xff] }
 0x16c   : > { %980 = vmatmul.mubr.f32.vlgmr.msra.gmra.mrb[4].mxu1 %v3529_v31  ;;  %v1224_v31 = vld [vmem:[#allocation10 + $0xa8] sm:$0xff]  ;;  %2483 = vmatprep.subr.bf16.mxu0 %v2482_v55  ;;  %v1325_v55 = vld [vmem:[#allocation10 + $0x3d0] sm:$0xff] }
 0x16d   : > { %2561 = vmatpush1.bf16.msra.mxu1 %v2560_v2  ;;  %v2562_v9 = vpack.c.bf16 %v1224_v31, %v1218_v5  ;;  %v2484_v2 = vpack.c.bf16 %v1269_v56, %v1263_v61  ;;  %v1275_v5 = vld [vmem:[#allocation10 + $0x240] sm:$0xff]  ;;  %v1277_v31 = vld [vmem:[#allocation10 + $0x250] sm:$0xff]  ;;  %v2598_v61 = vpack.c.bf16 %v1332_v48, %v1326_v62  ;;  %v1380_v44 = vld [vmem:[#allocation10 + $0x588] sm:$0xff] }
 0x16e   : > { %v2488_v13 = vpack.c.bf16 %v1281_v6, %v1275_v5  ;;  %v1331_v56 = vld [vmem:[#allocation10 + $0x400] sm:$0xff]  ;;  %v2602_v5 = vpack.c.bf16 %v1344_v60, %v1338_v59  ;;  %v1373_v62 = vld [vmem:[#allocation10 + $0x550] sm:$0xff] }
 0x16f   : > { %2563 = vmatprep.subr.bf16.mxu1 %v2562_v9  ;;  %v1288_v9 = vld [vmem:[#allocation10 + $0x2a8] sm:$0xff]  ;;  %2485 = vmatpush1.bf16.msra.mxu0 %v2484_v2  ;;  %v2600_v63 = vpack.c.bf16 %v1331_v56, %v1325_v55  ;;  %v1335_v2 = vld [vmem:[#allocation10 + $0x420] sm:$0xff]  ;;  %v1389_v56 = vld [vmem:[#allocation10 + $0x5d0] sm:$0xff] }
 0x170   : > { %2487 = vmatprep.subr.bf16.mxu0 %v2486_v4  ;;  %v2490_v15 = vpack.c.bf16 %v1294_v10, %v1288_v9  ;;  %v1337_v4 = vld [vmem:[#allocation10 + $0x430] sm:$0xff]  ;;  %v1343_v6 = vld [vmem:[#allocation10 + $0x460] sm:$0xff]  ;;  %v1356_v9 = vld [vmem:[#allocation10 + $0x4c8] sm:$0xff] }
 0x171   : > { %2565 = vmatpush1.bf16.msra.mxu1 %v2564_v14  ;;  %v2584_v14 = vpack.c.bf16 %v1283_v8, %v1277_v31  ;;  %v1348_v31 = vld [vmem:[#allocation10 + $0x488] sm:$0xff]  ;;  %v1350_v8 = vld [vmem:[#allocation10 + $0x498] sm:$0xff]  ;;  %v1379_v48 = vld [vmem:[#allocation10 + $0x580] sm:$0xff] }
 0x172   : > { %2567 = vmatprep.subr.bf16.mxu1 %v2566_v19  ;;  %v2586_v19 = vpack.c.bf16 %v1296_v12, %v1290_v11  ;;  %v2604_v12 = vpack.c.bf16 %v1343_v6, %v1337_v4  ;;  %v2606_v18 = vpack.c.bf16 %v1356_v9, %v1350_v8  ;;  %v1392_v55 = vld [vmem:[#allocation10 + $0x5e8] sm:$0xff]  ;;  %v1385_v59 = vld [vmem:[#allocation10 + $0x5b0] sm:$0xff]  ;;  %v1391_v60 = vld [vmem:[#allocation10 + $0x5e0] sm:$0xff] }
 0x173   : > { %2489 = vmatpush1.bf16.msra.mxu0 %v2488_v13  ;;  %v1404_v4 = vld [vmem:[#allocation10 + $0x648] sm:$0xff] }
 0x174   : > { %2491 = vmatprep.subr.bf16.mxu0 %v2490_v15  ;;  %v1353_v15 = vld [vmem:[#allocation10 + $0x4b0] sm:$0xff] }
 0x175   : > { %2569 = vmatpush1.bf16.msra.mxu1 %v2568_v27  ;;  %v2494_v27 = vpack.c.bf16 %v1306_v22, %v1300_v21  ;;  %v1366_v21 = vld [vmem:[#allocation10 + $0x518] sm:$0xff] }
 0x176   : > { %2571 = vmatprep.subr.bf16.mxu1 %v2570_v33  ;;  %v1307_v33 = vld [vmem:[#allocation10 + $0x340] sm:$0xff]  ;;  %v1362_v22 = vld [vmem:[#allocation10 + $0x4f8] sm:$0xff] }
 0x177   : > { %2493 = vmatpush1.bf16.msra.mxu0 %v2492_v25  ;;  %v2592_v40 = vpack.c.bf16 %v1307_v33, %v1301_v30  ;;  %v1361_v33 = vld [vmem:[#allocation10 + $0x4f0] sm:$0xff] }
 0x178   : > { %2495 = vmatprep.subr.bf16.mxu0 %v2494_v27  ;;  %v2514_v27 = vpack.c.bf16 %v1366_v21, %v1360_v20  ;;  %v2612_v37 = vpack.c.bf16 %v1367_v34, %v1361_v33  ;;  %v1403_v33 = vld [vmem:[#allocation10 + $0x640] sm:$0xff]  ;;  %v1408_v34 = vld [vmem:[#allocation10 + $0x668] sm:$0xff] }
 0x179   : > { %2573 = vmatpush1.bf16.msra.mxu1 %v2572_v43  ;;  %v1317_v43 = vld [vmem:[#allocation10 + $0x390] sm:$0xff] }
 0x17a   : > { %2575 = vmatprep.subr.bf16.mxu1 %v2574_v47  ;;  %v1330_v47 = vld [vmem:[#allocation10 + $0x3f8] sm:$0xff]  ;;  %v2500_v49 = vpack.c.bf16 %v1317_v43, %v1311_v42 }
 0x17b   : > { %2497 = vmatpush1.bf16.msra.mxu0 %v2496_v38  ;;  %v2502_v52 = vpack.c.bf16 %v1330_v47, %v1324_v46  ;;  %v1374_v42 = vld [vmem:[#allocation10 + $0x558] sm:$0xff] }
 0x17c   : > { %2499 = vmatprep.subr.bf16.mxu0 %v2498_v41  ;;  %v1378_v41 = vld [vmem:[#allocation10 + $0x578] sm:$0xff]  ;;  %v2614_v46 = vpack.c.bf16 %v1380_v44, %v1374_v42 }
 0x17d   : > { %2577 = vmatpush1.bf16.msra.mxu1 %v2576_v54  ;;  %v1329_v54 = vld [vmem:[#allocation10 + $0x3f0] sm:$0xff] }
 0x17e   : > { %2579 = vmatprep.subr.bf16.mxu1 %v2578_v58  ;;  %v1342_v58 = vld [vmem:[#allocation10 + $0x458] sm:$0xff]  ;;  %v2504_v50 = vpack.c.bf16 %v1329_v54, %v1323_v53 }
 0x17f   : > { %2501 = vmatpush1.bf16.msra.mxu0 %v2500_v49  ;;  %v2506_v1 = vpack.c.bf16 %v1342_v58, %v1336_v57  ;;  %v2616_v49 = vpack.c.bf16 %v1379_v48, %v1373_v62  ;;  %v1386_v53 = vld [vmem:[#allocation10 + $0x5b8] sm:$0xff]  ;;  %v1415_v62 = vld [vmem:[#allocation10 + $0x6a0] sm:$0xff]  ;;  %v1420_v48 = vld [vmem:[#allocation10 + $0x6c8] sm:$0xff] }
 0x180   : > { %2503 = vmatprep.subr.bf16.mxu0 %v2502_v52  ;;  %v1390_v52 = vld [vmem:[#allocation10 + $0x5d8] sm:$0xff]  ;;  %v2618_v57 = vpack.c.bf16 %v1392_v55, %v1386_v53  ;;  %v1419_v55 = vld [vmem:[#allocation10 + $0x6c0] sm:$0xff] }
 0x181   : > { %2581 = vmatpush1.bf16.msra.mxu1 %v2580_v3  ;;  %v1341_v3 = vld [vmem:[#allocation10 + $0x450] sm:$0xff] }
 0x182   : > { %2583 = vmatprep.subr.bf16.mxu1 %v2582_v7  ;;  %v1354_v7 = vld [vmem:[#allocation10 + $0x4b8] sm:$0xff]  ;;  %v2508_v10 = vpack.c.bf16 %v1341_v3, %v1335_v2 }
 0x183   : > { %2505 = vmatpush1.bf16.msra.mxu0 %v2504_v50  ;;  %v2510_v13 = vpack.c.bf16 %v1354_v7, %v1348_v31  ;;  %v2620_v50 = vpack.c.bf16 %v1391_v60, %v1385_v59  ;;  %v1398_v2 = vld [vmem:[#allocation10 + $0x618] sm:$0xff]  ;;  %v1427_v59 = vld [vmem:[#allocation10 + $0x700] sm:$0xff]  ;;  %v1432_v60 = vld [vmem:[#allocation10 + $0x728] sm:$0xff] }
 0x184   : > { %2507 = vmatprep.subr.bf16.mxu0 %v2506_v1  ;;  %v1402_v1 = vld [vmem:[#allocation10 + $0x638] sm:$0xff] }
 0x185   : > { %2585 = vmatpush1.bf16.msra.mxu1 %v2584_v14  ;;  %v1347_v14 = vld [vmem:[#allocation10 + $0x480] sm:$0xff] }
 0x186   : > { %2587 = vmatprep.subr.bf16.mxu1 %v2586_v19  ;;  %v1355_v19 = vld [vmem:[#allocation10 + $0x4c0] sm:$0xff]  ;;  %v2512_v24 = vpack.c.bf16 %v1353_v15, %v1347_v14 }
 0x187   : > { %2509 = vmatpush1.bf16.msra.mxu0 %v2508_v10 }
 0x188   : > { %2511 = vmatprep.subr.bf16.mxu0 %v2510_v13 }
 0x189   : > { %2589 = vmatpush1.bf16.msra.mxu1 %v2588_v26  ;;  %v2608_v26 = vpack.c.bf16 %v1355_v19, %v1349_v16 }
 0x18a   : > { %2591 = vmatprep.subr.bf16.mxu1 %v2590_v32  ;;  %v2610_v32 = vpack.c.bf16 %v1368_v23, %v1362_v22 }
 0x18b   : > { %2513 = vmatpush1.bf16.msra.mxu0 %v2512_v24 }
 0x18c   : > { %2515 = vmatprep.subr.bf16.mxu0 %v2514_v27 }
 0x18d   : > { %2593 = vmatpush1.bf16.msra.mxu1 %v2592_v40  ;;  %v1372_v40 = vld [vmem:[#allocation10 + $0x548] sm:$0xff] }
 0x18e   : > { %2595 = vmatprep.subr.bf16.mxu1 %v2594_v45  ;;  %v2518_v43 = vpack.c.bf16 %v1378_v41, %v1372_v40  ;;  %v1371_v45 = vld [vmem:[#allocation10 + $0x540] sm:$0xff]  ;;  %v1410_v40 = vld [vmem:[#allocation10 + $0x678] sm:$0xff]  ;;  %v1416_v41 = vld [vmem:[#allocation10 + $0x6a8] sm:$0xff] }
 0x18f   : > { %2517 = vmatpush1.bf16.msra.mxu0 %v2516_v35  ;;  %v2520_v47 = vpack.c.bf16 %v1377_v39, %v1371_v45  ;;  %v1407_v45 = vld [vmem:[#allocation10 + $0x660] sm:$0xff] }
 0x190   : > { %2519 = vmatprep.subr.bf16.mxu0 %v2518_v43 }
 0x191   : > { %2597 = vmatpush1.bf16.msra.mxu1 %v2596_v51  ;;  %v1384_v51 = vld [vmem:[#allocation10 + $0x5a8] sm:$0xff] }
 0x192   : > { %2599 = vmatprep.subr.bf16.mxu1 %v2598_v61  ;;  %v2522_v54 = vpack.c.bf16 %v1390_v52, %v1384_v51  ;;  %v1383_v61 = vld [vmem:[#allocation10 + $0x5a0] sm:$0xff]  ;;  %v1422_v51 = vld [vmem:[#allocation10 + $0x6d8] sm:$0xff]  ;;  %v1428_v52 = vld [vmem:[#allocation10 + $0x708] sm:$0xff] }
 0x193   : > { %2521 = vmatpush1.bf16.msra.mxu0 %v2520_v47  ;;  %v2524_v58 = vpack.c.bf16 %v1389_v56, %v1383_v61  ;;  %v1409_v47 = vld [vmem:[#allocation10 + $0x670] sm:$0xff] }
 0x194   : > { %2523 = vmatprep.subr.bf16.mxu0 %v2522_v54  ;;  %v2628_v54 = vpack.c.bf16 %v1415_v62, %v1409_v47  ;;  %v1425_v61 = vld [vmem:[#allocation10 + $0x6f0] sm:$0xff]  ;;  %v1475_v62 = vld [vmem:[#allocation10 + $0x880] sm:$0xff] }
 0x195   : > { %2601 = vmatpush1.bf16.msra.mxu1 %v2600_v63  ;;  %v1396_v63 = vld [vmem:[#allocation10 + $0x608] sm:$0xff]  ;;  %v1469_v47 = vld [vmem:[#allocation10 + $0x850] sm:$0xff] }
 0x196   : > { %2603 = vmatprep.subr.bf16.mxu1 %v2602_v5  ;;  %v2526_v3 = vpack.c.bf16 %v1402_v1, %v1396_v63  ;;  %v2622_v5 = vpack.c.bf16 %v1404_v4, %v1398_v2  ;;  %v1434_v63 = vld [vmem:[#allocation10 + $0x738] sm:$0xff]  ;;  %v1440_v1 = vld [vmem:[#allocation10 + $0x768] sm:$0xff]  ;;  %v2536_v2 = vpack.c.bf16 %v1425_v61, %v1419_v55  ;;  %v1431_v4 = vld [vmem:[#allocation10 + $0x720] sm:$0xff] }
 0x197   : > { %2525 = vmatpush1.bf16.msra.mxu0 %v2524_v58  ;;  %v1421_v58 = vld [vmem:[#allocation10 + $0x6d0] sm:$0xff]  ;;  %v1479_v55 = vld [vmem:[#allocation10 + $0x8a0] sm:$0xff] }
 0x198   : > { %2527 = vmatprep.subr.bf16.mxu0 %v2526_v3  ;;  %v2632_v3 = vpack.c.bf16 %v1427_v59, %v1421_v58  ;;  %v1481_v58 = vld [vmem:[#allocation10 + $0x8b0] sm:$0xff]  ;;  %v1487_v59 = vld [vmem:[#allocation10 + $0x8e0] sm:$0xff] }
 0x199   : > { %2605 = vmatpush1.bf16.msra.mxu1 %v2604_v12 }
 0x19a   : > { %2607 = vmatprep.subr.bf16.mxu1 %v2606_v18 }
 0x19d   : > { %2609 = vmatpush1.bf16.msra.mxu1 %v2608_v26 }
 0x19e   : > { %2611 = vmatprep.subr.bf16.mxu1 %v2610_v32 }
 0x1a1   : > { %2613 = vmatpush1.bf16.msra.mxu1 %v2612_v37 }
 0x1a2   : > { %2615 = vmatprep.subr.bf16.mxu1 %v2614_v46  ;;  %v2626_v46 = vpack.c.bf16 %v1416_v41, %v1410_v40  ;;  %v1470_v40 = vld [vmem:[#allocation10 + $0x858] sm:$0xff]  ;;  %v1476_v41 = vld [vmem:[#allocation10 + $0x888] sm:$0xff] }
 0x1a5   : > { %2617 = vmatpush1.bf16.msra.mxu1 %v2616_v49  ;;  %v1426_v49 = vld [vmem:[#allocation10 + $0x6f8] sm:$0xff] }
 0x1a6   : > { %2619 = vmatprep.subr.bf16.mxu1 %v2618_v57  ;;  %v2534_v56 = vpack.c.bf16 %v1426_v49, %v1420_v48  ;;  %v2630_v57 = vpack.c.bf16 %v1428_v52, %v1422_v51  ;;  %v1480_v48 = vld [vmem:[#allocation10 + $0x8a8] sm:$0xff]  ;;  %v1486_v49 = vld [vmem:[#allocation10 + $0x8d8] sm:$0xff] }
 0x1a7   : > { %v1482_v51 = vld [vmem:[#allocation10 + $0x8b8] sm:$0xff]  ;;  %v1488_v52 = vld [vmem:[#allocation10 + $0x8e8] sm:$0xff]  ;;  %v2554_v61 = vpack.c.bf16 %v1486_v49, %v1480_v48 }
 0x1a8   : > { %v3546_v11 = vpop.f32.mrb[0].mxu0  ;;  %v1304_v48 = vld [vmem:[#allocation10 + $0x328] sm:$0xff]  ;;  %v1310_v49 = vld [vmem:[#allocation10 + $0x358] sm:$0xff] }
 0x1a9   : > { %v3548_v17 = vpop.f32.mrb[1].mxu0  ;;  %2621 = vmatpush1.bf16.msra.mxu1 %v2620_v50  ;;  %v1438_v50 = vld [vmem:[#allocation10 + $0x758] sm:$0xff] }
 0x1aa   : > { %2623 = vmatprep.subr.bf16.mxu1 %v2622_v5  ;;  %v1437_v5 = vld [vmem:[#allocation10 + $0x750] sm:$0xff] }
 0x1ac   : > { %v3550_v25 = vpop.f32.mrb[2].mxu0 }
 0x1ad   : > { %v2264_v30 = vpop.f32.mrb[3].mxu0 }
 0x1b0   : > { %v3552_v36 = vpop.f32.mrb[4].mxu0 }
 0x1b1   : > { %v3554_v38 = vpop.f32.mrb[5].mxu0 }
 0x1d0   : > { %v2255_v6 = vpop.f32.mrb[6].mxu0 }
 0x1d1   : > { %v2256_v31 = vpop.f32.mrb[7].mxu0 }
 0x1d2   : > { %v2257_v7 = vadd.f32 %v2256_v31, %v2255_v6  ;;  %v2538_v6 = vpack.c.bf16 %v1438_v50, %v1432_v60  ;;  %v2634_v31 = vpack.c.bf16 %v1440_v1, %v1434_v63  ;;  %v1208_v60 = vld [vmem:[#allocation10 + $0x28] sm:$0xff]  ;;  %v1214_v50 = vld [vmem:[#allocation10 + $0x58] sm:$0xff]  ;;  %v2652_v1 = vpack.c.bf16 %v1487_v59, %v1481_v58  ;;  %v1315_v58 = vld [vmem:[#allocation10 + $0x380] sm:$0xff] }
 0x1d3   : > { %v1321_v59 = vld [vmem:[#allocation10 + $0x3b0] sm:$0xff] }
 0x1d4   : > { %v1193_v8 = vpop.f32.mrb[8].mxu0 }
 0x1d5   : > { %v1194_v9 = vadd.f32 %v2257_v7, %v1193_v8  ;;  %v2269_v10 = vpop.f32.mrb[9].mxu0  ;;  %v1433_v7 = vld [vmem:[#allocation10 + $0x730] sm:$0xff]  ;;  %v1439_v8 = vld [vmem:[#allocation10 + $0x760] sm:$0xff] }
 0x1d6   : > { %v1450_v10 = vld [vmem:[#allocation10 + $0x7b8] sm:$0xff] }
 0x1d7   : > { %v1199_v21 = vmax.f32 %v1194_v9, 0.0  ;;  %v1444_v9 = vld [vmem:[#allocation10 + $0x788] sm:$0xff] }
 0x1df   : > { %v585_v12 = vpop.f32.mrb[0].mxu1 }
 0x1e0   : > { %v657_v13 = vadd.f32 %v3546_v11, %v585_v12  ;;  %v587_v14 = vpop.f32.mrb[1].mxu1  ;;  %v1401_v11 = vld [vmem:[#allocation10 + $0x630] sm:$0xff]  ;;  %v1446_v12 = vld [vmem:[#allocation10 + $0x798] sm:$0xff] }
 0x1e1   : > { %v659_v15 = vadd.f32 %v3548_v17, %v587_v14  ;;  %v1397_v17 = vld [vmem:[#allocation10 + $0x610] sm:$0xff]  ;;  %v2540_v14 = vpack.c.bf16 %v1437_v5, %v1431_v4  ;;  %v1220_v5 = vld [vmem:[#allocation10 + $0x88] sm:$0xff] }
 0x1e2   : > { %v801_v30 = vmax.f32 %v657_v13, 0.0  ;;  %v2624_v44 = vpack.c.bf16 %v1403_v33, %v1397_v17  ;;  %v1452_v13 = vld [vmem:[#allocation10 + $0x7c8] sm:$0xff]  ;;  %v1213_v4 = vld [vmem:[#allocation10 + $0x50] sm:$0xff] }
 0x1e3   : > { %v802_v35 = vmax.f32 %v659_v15, 0.0  ;;  %v2636_v15 = vpack.c.bf16 %v1439_v8, %v1433_v7  ;;  %v1219_v8 = vld [vmem:[#allocation10 + $0x80] sm:$0xff] }
 0x1ff   : > { %v2218_v16 = vpop.f32.mrb[2].mxu1 }
 0x200   : > { %v2219_v18 = vpop.f32.mrb[3].mxu1 }
 0x201   : > { %v2220_v19 = vadd.f32 %v2219_v18, %v2218_v16  ;;  %v1443_v16 = vld [vmem:[#allocation10 + $0x780] sm:$0xff]  ;;  %v1449_v18 = vld [vmem:[#allocation10 + $0x7b0] sm:$0xff] }
 0x203   : > { %v798_v20 = vadd.f32 %v2220_v19, %v3550_v25  ;;  %v1414_v25 = vld [vmem:[#allocation10 + $0x698] sm:$0xff]  ;;  %v2542_v19 = vpack.c.bf16 %v1450_v10, %v1444_v9  ;;  %v1225_v9 = vld [vmem:[#allocation10 + $0xb0] sm:$0xff]  ;;  %v1232_v10 = vld [vmem:[#allocation10 + $0xe8] sm:$0xff] }
 0x204   : > { %v2530_v39 = vpack.c.bf16 %v1414_v25, %v1408_v34  ;;  %v1457_v34 = vld [vmem:[#allocation10 + $0x7f0] sm:$0xff]  ;;  %v1474_v25 = vld [vmem:[#allocation10 + $0x878] sm:$0xff] }
 0x205   : > { %v803_v22 = vmax.f32 %v798_v20, 0.0  ;;  %v2638_v20 = vpack.c.bf16 %v1452_v13, %v1446_v12  ;;  %v1238_v12 = vld [vmem:[#allocation10 + $0x118] sm:$0xff]  ;;  %v2660_v13 = vpack.c.bf16 %v1225_v9, %v1219_v8  ;;  %v1345_v8 = vld [vmem:[#allocation10 + $0x470] sm:$0xff]  ;;  %v1352_v9 = vld [vmem:[#allocation10 + $0x4a8] sm:$0xff] }
 0x207   : > { %v3559_v23 = vadd.f32 %v1199_v21, %v803_v22  ;;  %v1445_v21 = vld [vmem:[#allocation10 + $0x790] sm:$0xff]  ;;  %v1451_v22 = vld [vmem:[#allocation10 + $0x7c0] sm:$0xff] }
 0x23f   : > { %v981_v24 = vpop.f32.mrb[4].mxu1 }
 0x240   : > { %v1053_v26 = vadd.f32 %v3552_v36, %v981_v24  ;;  %v983_v27 = vpop.f32.mrb[5].mxu1  ;;  %v2528_v36 = vpack.c.bf16 %v1401_v11, %v1395_v29  ;;  %v1456_v24 = vld [vmem:[#allocation10 + $0x7e8] sm:$0xff]  ;;  %v2544_v29 = vpack.c.bf16 %v1449_v18, %v1443_v16  ;;  %v2640_v11 = vpack.c.bf16 %v1451_v22, %v1445_v21  ;;  %v1237_v16 = vld [vmem:[#allocation10 + $0x110] sm:$0xff]  ;;  %v1243_v22 = vld [vmem:[#allocation10 + $0x140] sm:$0xff] }
 0x241   : > { %v1055_v28 = vadd.f32 %v3554_v38, %v983_v27  ;;  %v1413_v38 = vld [vmem:[#allocation10 + $0x690] sm:$0xff]  ;;  %v1458_v27 = vld [vmem:[#allocation10 + $0x7f8] sm:$0xff]  ;;  %v1244_v18 = vld [vmem:[#allocation10 + $0x148] sm:$0xff] }
 0x242   : > { %v1197_v32 = vmax.f32 %v1053_v26, 0.0  ;;  %v2532_v53 = vpack.c.bf16 %v1413_v38, %v1407_v45  ;;  %v1462_v26 = vld [vmem:[#allocation10 + $0x818] sm:$0xff]  ;;  %v1467_v45 = vld [vmem:[#allocation10 + $0x840] sm:$0xff]  ;;  %v1473_v38 = vld [vmem:[#allocation10 + $0x870] sm:$0xff] }
 0x243   : > { %v1198_v37 = vmax.f32 %v1055_v28, 0.0  ;;  %v1464_v28 = vld [vmem:[#allocation10 + $0x828] sm:$0xff]  ;;  %v2546_v17 = vpack.c.bf16 %v1462_v26, %v1456_v24  ;;  %v1249_v24 = vld [vmem:[#allocation10 + $0x170] sm:$0xff] }
 0x244   : > { %v3563_v42 = vadd.f32 %v1197_v32, %v801_v30  ;;  %v1455_v30 = vld [vmem:[#allocation10 + $0x7e0] sm:$0xff]  ;;  %v1461_v32 = vld [vmem:[#allocation10 + $0x810] sm:$0xff]  ;;  %v2642_v33 = vpack.c.bf16 %v1464_v28, %v1458_v27  ;;  %v1256_v26 = vld [vmem:[#allocation10 + $0x1a8] sm:$0xff]  ;;  %v2668_v28 = vpack.c.bf16 %v1249_v24, %v1243_v22 }
 0x245   : > { %v3565_v43 = vadd.f32 %v1198_v37, %v802_v35  ;;  %v1463_v35 = vld [vmem:[#allocation10 + $0x820] sm:$0xff]  ;;  %v1468_v37 = vld [vmem:[#allocation10 + $0x848] sm:$0xff]  ;;  %v1262_v27 = vld [vmem:[#allocation10 + $0x1d8] sm:$0xff] }
 0x246   : > { %v1369_v22 = vld [vmem:[#allocation10 + $0x530] sm:$0xff]  ;;  %v1376_v24 = vld [vmem:[#allocation10 + $0x568] sm:$0xff] }
 0x247   : > { %1587 = vmatprep.mubr.f32.mxu0 %v3565_v43  ;;  %1729 = vmatprep.mubr.f32.mxu1 %v3565_v43 }
 0x248   : > { %1588 = vmatmul.mubr.f32.vlgmr.msra.gmra.mrb[10].mxu0 %v3563_v42  ;;  %1730 = vmatmul.mubr.f32.vlgmr.msra.gmra.mrb[6].mxu1 %v3563_v42 }
 0x249   : > { %2529 = vmatpush1.bf16.msra.mxu0 %v2528_v36  ;;  %2625 = vmatpush1.bf16.msra.mxu1 %v2624_v44  ;;  %v2548_v36 = vpack.c.bf16 %v1461_v32, %v1455_v30  ;;  %v2644_v44 = vpack.c.bf16 %v1463_v35, %v1457_v34  ;;  %v1268_v30 = vld [vmem:[#allocation10 + $0x208] sm:$0xff]  ;;  %v1274_v32 = vld [vmem:[#allocation10 + $0x238] sm:$0xff]  ;;  %v1267_v34 = vld [vmem:[#allocation10 + $0x200] sm:$0xff] }
 0x24a   : > { %2531 = vmatprep.subr.bf16.mxu0 %v2530_v39  ;;  %2627 = vmatprep.subr.bf16.mxu1 %v2626_v46  ;;  %v2550_v39 = vpack.c.bf16 %v1474_v25, %v1468_v37  ;;  %v2646_v46 = vpack.c.bf16 %v1476_v41, %v1470_v40  ;;  %v1273_v35 = vld [vmem:[#allocation10 + $0x230] sm:$0xff]  ;;  %v1280_v37 = vld [vmem:[#allocation10 + $0x268] sm:$0xff]  ;;  %v1286_v25 = vld [vmem:[#allocation10 + $0x298] sm:$0xff] }
 0x24b   : > { %1658 = vmatprep.mubr.f32.mxu0 %v3180_v0  ;;  %1800 = vmatprep.mubr.f32.mxu1 %v3180_v0  ;;  %v2676_v40 = vpack.c.bf16 %v1273_v35, %v1267_v34  ;;  %v2678_v41 = vpack.c.bf16 %v1286_v25, %v1280_v37  ;;  %v1393_v34 = vld [vmem:[#allocation10 + $0x5f0] sm:$0xff]  ;;  %v1400_v35 = vld [vmem:[#allocation10 + $0x628] sm:$0xff]  ;;  %v1406_v37 = vld [vmem:[#allocation10 + $0x658] sm:$0xff] }
 0x24d   : > { %2533 = vmatpush1.bf16.msra.mxu0 %v2532_v53  ;;  %2629 = vmatpush1.bf16.msra.mxu1 %v2628_v54  ;;  %v2552_v53 = vpack.c.bf16 %v1473_v38, %v1467_v45  ;;  %v2648_v54 = vpack.c.bf16 %v1475_v62, %v1469_v47  ;;  %v1292_v45 = vld [vmem:[#allocation10 + $0x2c8] sm:$0xff]  ;;  %v1298_v38 = vld [vmem:[#allocation10 + $0x2f8] sm:$0xff]  ;;  %v1291_v47 = vld [vmem:[#allocation10 + $0x2c0] sm:$0xff] }
 0x24e   : > { %2535 = vmatprep.subr.bf16.mxu0 %v2534_v56  ;;  %2631 = vmatprep.subr.bf16.mxu1 %v2630_v57  ;;  %v2650_v56 = vpack.c.bf16 %v1488_v52, %v1482_v51  ;;  %v1485_v57 = vld [vmem:[#allocation10 + $0x8d0] sm:$0xff]  ;;  %v2686_v52 = vpack.c.bf16 %v1310_v49, %v1304_v48  ;;  %v1430_v48 = vld [vmem:[#allocation10 + $0x718] sm:$0xff] }
 0x24f   : > { %v2556_v63 = vpack.c.bf16 %v1485_v57, %v1479_v55  ;;  %v1297_v62 = vld [vmem:[#allocation10 + $0x2f0] sm:$0xff]  ;;  %v1316_v55 = vld [vmem:[#allocation10 + $0x388] sm:$0xff] }
 0x250   : > { %v2684_v51 = vpack.c.bf16 %v1297_v62, %v1291_v47  ;;  %v1417_v47 = vld [vmem:[#allocation10 + $0x6b0] sm:$0xff]  ;;  %v1424_v62 = vld [vmem:[#allocation10 + $0x6e8] sm:$0xff] }
 0x251   : > { %2537 = vmatpush1.bf16.msra.mxu0 %v2536_v2  ;;  %2633 = vmatpush1.bf16.msra.mxu1 %v2632_v3  ;;  %v2654_v2 = vpack.c.bf16 %v1214_v50, %v1208_v60  ;;  %v1207_v3 = vld [vmem:[#allocation10 + $0x20] sm:$0xff]  ;;  %v1328_v60 = vld [vmem:[#allocation10 + $0x3e8] sm:$0xff]  ;;  %v1334_v50 = vld [vmem:[#allocation10 + $0x418] sm:$0xff] }
 0x252   : > { %2539 = vmatprep.subr.bf16.mxu0 %v2538_v6  ;;  %2635 = vmatprep.subr.bf16.mxu1 %v2634_v31  ;;  %v1226_v6 = vld [vmem:[#allocation10 + $0xb8] sm:$0xff]  ;;  %v2656_v31 = vpack.c.bf16 %v1213_v4, %v1207_v3  ;;  %v1333_v3 = vld [vmem:[#allocation10 + $0x410] sm:$0xff]  ;;  %v1340_v4 = vld [vmem:[#allocation10 + $0x448] sm:$0xff] }
 0x253   : > { %v2658_v7 = vpack.c.bf16 %v1226_v6, %v1220_v5  ;;  %v1346_v5 = vld [vmem:[#allocation10 + $0x478] sm:$0xff] }
 0x255   : > { %2541 = vmatpush1.bf16.msra.mxu0 %v2540_v14  ;;  %2637 = vmatpush1.bf16.msra.mxu1 %v2636_v15  ;;  %v2662_v14 = vpack.c.bf16 %v1238_v12, %v1232_v10  ;;  %v1231_v15 = vld [vmem:[#allocation10 + $0xe0] sm:$0xff]  ;;  %v1358_v10 = vld [vmem:[#allocation10 + $0x4d8] sm:$0xff] }
 0x256   : > { %2543 = vmatprep.subr.bf16.mxu0 %v2542_v19  ;;  %2639 = vmatprep.subr.bf16.mxu1 %v2638_v20  ;;  %v1250_v19 = vld [vmem:[#allocation10 + $0x178] sm:$0xff]  ;;  %v2664_v20 = vpack.c.bf16 %v1237_v16, %v1231_v15  ;;  %v1357_v15 = vld [vmem:[#allocation10 + $0x4d0] sm:$0xff]  ;;  %v1364_v16 = vld [vmem:[#allocation10 + $0x508] sm:$0xff] }
 0x257   : > { %v2666_v21 = vpack.c.bf16 %v1250_v19, %v1244_v18  ;;  %v1370_v18 = vld [vmem:[#allocation10 + $0x538] sm:$0xff] }
 0x259   : > { %2545 = vmatpush1.bf16.msra.mxu0 %v2544_v29  ;;  %2641 = vmatpush1.bf16.msra.mxu1 %v2640_v11  ;;  %v2670_v29 = vpack.c.bf16 %v1262_v27, %v1256_v26  ;;  %v1261_v11 = vld [vmem:[#allocation10 + $0x1d0] sm:$0xff]  ;;  %v1382_v26 = vld [vmem:[#allocation10 + $0x598] sm:$0xff] }
 0x25a   : > { %2547 = vmatprep.subr.bf16.mxu0 %v2546_v17  ;;  %2643 = vmatprep.subr.bf16.mxu1 %v2642_v33  ;;  %v2674_v33 = vpack.c.bf16 %v1274_v32, %v1268_v30  ;;  %v1394_v30 = vld [vmem:[#allocation10 + $0x5f8] sm:$0xff] }
 0x25d   : > { %2549 = vmatpush1.bf16.msra.mxu0 %v2548_v36  ;;  %2645 = vmatpush1.bf16.msra.mxu1 %v2644_v44  ;;  %v1279_v36 = vld [vmem:[#allocation10 + $0x260] sm:$0xff]  ;;  %v1285_v44 = vld [vmem:[#allocation10 + $0x290] sm:$0xff] }
 0x25e   : > { %2551 = vmatprep.subr.bf16.mxu0 %v2550_v39  ;;  %2647 = vmatprep.subr.bf16.mxu1 %v2646_v46  ;;  %v2680_v39 = vpack.c.bf16 %v1285_v44, %v1279_v36  ;;  %v2682_v46 = vpack.c.bf16 %v1298_v38, %v1292_v45  ;;  %v1405_v36 = vld [vmem:[#allocation10 + $0x650] sm:$0xff]  ;;  %v1412_v44 = vld [vmem:[#allocation10 + $0x688] sm:$0xff]  ;;  %v1418_v45 = vld [vmem:[#allocation10 + $0x6b8] sm:$0xff] }
 0x261   : > { %2553 = vmatpush1.bf16.msra.mxu0 %v2552_v53  ;;  %2649 = vmatpush1.bf16.msra.mxu1 %v2648_v54  ;;  %v1303_v53 = vld [vmem:[#allocation10 + $0x320] sm:$0xff]  ;;  %v1309_v54 = vld [vmem:[#allocation10 + $0x350] sm:$0xff] }
 0x262   : > { %2555 = vmatprep.subr.bf16.mxu0 %v2554_v61  ;;  %2651 = vmatprep.subr.bf16.mxu1 %v2650_v56  ;;  %v1322_v61 = vld [vmem:[#allocation10 + $0x3b8] sm:$0xff]  ;;  %v2688_v56 = vpack.c.bf16 %v1309_v54, %v1303_v53  ;;  %v1429_v53 = vld [vmem:[#allocation10 + $0x710] sm:$0xff]  ;;  %v1436_v54 = vld [vmem:[#allocation10 + $0x748] sm:$0xff] }
 0x263   : > { %v2690_v57 = vpack.c.bf16 %v1322_v61, %v1316_v55  ;;  %v1442_v55 = vld [vmem:[#allocation10 + $0x778] sm:$0xff] }
 0x265   : > { %2557 = vmatpush1.bf16.msra.mxu0 %v2556_v63  ;;  %2653 = vmatpush1.bf16.msra.mxu1 %v2652_v1  ;;  %v2692_v63 = vpack.c.bf16 %v1321_v59, %v1315_v58  ;;  %v2694_v1 = vpack.c.bf16 %v1334_v50, %v1328_v60  ;;  %v1441_v58 = vld [vmem:[#allocation10 + $0x770] sm:$0xff]  ;;  %v1448_v59 = vld [vmem:[#allocation10 + $0x7a8] sm:$0xff]  ;;  %v1454_v60 = vld [vmem:[#allocation10 + $0x7d8] sm:$0xff] }
 0x266   : > { %2655 = vmatprep.subr.bf16.mxu0 %v2654_v2  ;;  %v1327_v2 = vld [vmem:[#allocation10 + $0x3e0] sm:$0xff]  ;;  %v2734_v50 = vpack.c.bf16 %v1454_v60, %v1448_v59 }
 0x267   : > { %v2696_v6 = vpack.c.bf16 %v1333_v3, %v1327_v2  ;;  %v1466_v2 = vld [vmem:[#allocation10 + $0x838] sm:$0xff] }
 0x268   : > { %1659 = vmatmul.mubr.f32.vlgmr.msra.gmra.mrb[10].mxu0 %v3559_v23  ;;  %1801 = vmatmul.mubr.f32.vlgmr.msra.gmra.mrb[6].mxu1 %v3559_v23 }
 0x269   : > { %2657 = vmatpush1.bf16.msra.mxu0 %v2656_v31  ;;  %1871 = vmatprep.mubr.f32.mxu0 %v3565_v43  ;;  %v1255_v43 = vld [vmem:[#allocation10 + $0x1a0] sm:$0xff]  ;;  %v2698_v31 = vpack.c.bf16 %v1346_v5, %v1340_v4 }
 0x26a   : > { %2659 = vmatprep.subr.bf16.mxu0 %v2658_v7  ;;  %v2672_v17 = vpack.c.bf16 %v1261_v11, %v1255_v43  ;;  %v1339_v7 = vld [vmem:[#allocation10 + $0x440] sm:$0xff]  ;;  %v1381_v43 = vld [vmem:[#allocation10 + $0x590] sm:$0xff]  ;;  %v1388_v11 = vld [vmem:[#allocation10 + $0x5c8] sm:$0xff] }
 0x26b   : > { %v2700_v12 = vpack.c.bf16 %v1345_v8, %v1339_v7  ;;  %v1459_v5 = vld [vmem:[#allocation10 + $0x800] sm:$0xff]  ;;  %v1478_v7 = vld [vmem:[#allocation10 + $0x898] sm:$0xff] }
 0x26d   : > { %2661 = vmatpush1.bf16.msra.mxu0 %v2660_v13  ;;  %v2702_v13 = vpack.c.bf16 %v1358_v10, %v1352_v9  ;;  %v1471_v10 = vld [vmem:[#allocation10 + $0x860] sm:$0xff] }
 0x26e   : > { %2663 = vmatprep.subr.bf16.mxu0 %v2662_v14  ;;  %v1351_v14 = vld [vmem:[#allocation10 + $0x4a0] sm:$0xff] }
 0x26f   : > { %v2704_v19 = vpack.c.bf16 %v1357_v15, %v1351_v14  ;;  %v1490_v14 = vld [vmem:[#allocation10 + $0x8f8] sm:$0xff] }
 0x271   : > { %2665 = vmatpush1.bf16.msra.mxu0 %v2664_v20  ;;  %v2706_v20 = vpack.c.bf16 %v1370_v18, %v1364_v16  ;;  %v1483_v18 = vld [vmem:[#allocation10 + $0x8c0] sm:$0xff] }
 0x272   : > { %2667 = vmatprep.subr.bf16.mxu0 %v2666_v21  ;;  %v1363_v21 = vld [vmem:[#allocation10 + $0x500] sm:$0xff] }
 0x273   : > { %v2708_v27 = vpack.c.bf16 %v1369_v22, %v1363_v21  ;;  %v1493_v21 = vlaneseq }
 0x275   : > { %2669 = vmatpush1.bf16.msra.mxu0 %v2668_v28  ;;  %v2710_v28 = vpack.c.bf16 %v1382_v26, %v1376_v24  ;;  %v3579_v22 = vshrl.u32 %v1493_v21, 7 }
 0x276   : > { %2671 = vmatprep.subr.bf16.mxu0 %v2670_v29  ;;  %v1375_v29 = vld [vmem:[#allocation10 + $0x560] sm:$0xff] }
 0x277   : > { %v2712_v32 = vpack.c.bf16 %v1381_v43, %v1375_v29  ;;  %v1495_v24 = vsub.s32 0, %v3579_v22  ;;  %v1503_v26 = vsub.s32 2, %v3579_v22  ;;  %v1507_v29 = vsub.s32 3, %v3579_v22 }
 0x279   : > { %2673 = vmatpush1.bf16.msra.mxu0 %v2672_v17  ;;  %v2714_v17 = vpack.c.bf16 %v1394_v30, %v1388_v11 }
 0x27a   : > { %2675 = vmatprep.subr.bf16.mxu0 %v2674_v33  ;;  %v1387_v33 = vld [vmem:[#allocation10 + $0x5c0] sm:$0xff] }
 0x27b   : > { %v2716_v25 = vpack.c.bf16 %v1393_v34, %v1387_v33 }
 0x27d   : > { %2677 = vmatpush1.bf16.msra.mxu0 %v2676_v40  ;;  %v2718_v40 = vpack.c.bf16 %v1406_v37, %v1400_v35 }
 0x27e   : > { %2679 = vmatprep.subr.bf16.mxu0 %v2678_v41  ;;  %v1399_v41 = vld [vmem:[#allocation10 + $0x620] sm:$0xff] }
 0x27f   : > { %v2720_v38 = vpack.c.bf16 %v1405_v36, %v1399_v41  ;;  %v2876_v41 = vld [vmem:[%s3476_s28] sm:$0xff] }
 0x281   : > { %2681 = vmatpush1.bf16.msra.mxu0 %v2680_v39  ;;  %v2722_v39 = vpack.c.bf16 %v1418_v45, %v1412_v44  ;;  %v2877_v44 = vld [vmem:[%s3476_s28 + $0x10] sm:$0xff] }
 0x282   : > { %2683 = vmatprep.subr.bf16.mxu0 %v2682_v46  ;;  %v1411_v46 = vld [vmem:[#allocation10 + $0x680] sm:$0xff] }
 0x283   : > { %v2724_v49 = vpack.c.bf16 %v1417_v47, %v1411_v46  ;;  %v2879_v46 = vld [vmem:[%s3484_s13] sm:$0xff] }
 0x285   : > { %2685 = vmatpush1.bf16.msra.mxu0 %v2684_v51  ;;  %v2726_v51 = vpack.c.bf16 %v1430_v48, %v1424_v62 }
 0x286   : > { %2687 = vmatprep.subr.bf16.mxu0 %v2686_v52  ;;  %v1423_v52 = vld [vmem:[#allocation10 + $0x6e0] sm:$0xff] }
 0x287   : > { %v2728_v61 = vpack.c.bf16 %v1429_v53, %v1423_v52 }
 0x289   : > { %2689 = vmatpush1.bf16.msra.mxu0 %v2688_v56  ;;  %v2730_v56 = vpack.c.bf16 %v1442_v55, %v1436_v54 }
 0x28a   : > { %2691 = vmatprep.subr.bf16.mxu0 %v2690_v57  ;;  %v1435_v57 = vld [vmem:[#allocation10 + $0x740] sm:$0xff] }
 0x28d   : > { %2693 = vmatpush1.bf16.msra.mxu0 %v2692_v63  ;;  %v1447_v63 = vld [vmem:[#allocation10 + $0x7a0] sm:$0xff] }
 0x28e   : > { %2695 = vmatprep.subr.bf16.mxu0 %v2694_v1  ;;  %v1460_v1 = vld [vmem:[#allocation10 + $0x808] sm:$0xff] }
 0x28f   : > { %v2738_v4 = vpack.c.bf16 %v1466_v2, %v1460_v1 }
 0x291   : > { %2697 = vmatpush1.bf16.msra.mxu0 %v2696_v6  ;;  %v1465_v6 = vld [vmem:[#allocation10 + $0x830] sm:$0xff] }
 0x292   : > { %2699 = vmatprep.subr.bf16.mxu0 %v2698_v31  ;;  %v1472_v31 = vld [vmem:[#allocation10 + $0x868] sm:$0xff]  ;;  %v2740_v8 = vpack.c.bf16 %v1465_v6, %v1459_v5 }
 0x293   : > { %v2742_v9 = vpack.c.bf16 %v1478_v7, %v1472_v31 }
 0x295   : > { %2701 = vmatpush1.bf16.msra.mxu0 %v2700_v12  ;;  %v1477_v12 = vld [vmem:[#allocation10 + $0x890] sm:$0xff] }
 0x296   : > { %2703 = vmatprep.subr.bf16.mxu0 %v2702_v13  ;;  %v1484_v13 = vld [vmem:[#allocation10 + $0x8c8] sm:$0xff]  ;;  %v2744_v15 = vpack.c.bf16 %v1477_v12, %v1471_v10 }
 0x297   : > { %v2746_v16 = vpack.c.bf16 %v1490_v14, %v1484_v13 }
 0x299   : > { %2705 = vmatpush1.bf16.msra.mxu0 %v2704_v19  ;;  %v1489_v19 = vld [vmem:[#allocation10 + $0x8f0] sm:$0xff] }
 0x29a   : > { %2707 = vmatprep.subr.bf16.mxu0 %v2706_v20  ;;  %v2748_v20 = vpack.c.bf16 %v1489_v19, %v1483_v18 }
 0x29d   : > { %2709 = vmatpush1.bf16.msra.mxu0 %v2708_v27  ;;  %v3583_v27 = vld [vmem:[#allocation11] sm:$0x3f] }
 0x29e   : > { %2711 = vmatprep.subr.bf16.mxu0 %v2710_v28  ;;  %v1499_v28 = vsub.s32 1, %v3579_v22  ;;  %v1496_v43 = vrot.slane %v3583_v27, %v1495_v24  ;;  %v1504_v11 = vrot.slane %v3583_v27, %v1503_v26  ;;  %v1508_v30 = vrot.slane %v3583_v27, %v1507_v29 }
 0x2a1   : > { %2713 = vmatpush1.bf16.msra.mxu0 %v2712_v32 }
 0x2a2   : > { %2715 = vmatprep.subr.bf16.mxu0 %v2714_v17 }
 0x2a5   : > { %2717 = vmatpush1.bf16.msra.mxu0 %v2716_v25 }
 0x2a6   : > { %2719 = vmatprep.subr.bf16.mxu0 %v2718_v40 }
 0x2a8   : > { %1872 = vmatmul.mubr.f32.vlgmr.msra.gmra.mrb[12].mxu0 %v3563_v42  ;;  %v2732_v42 = vpack.c.bf16 %v1441_v58, %v1435_v57 }
 0x2a9   : > { %2721 = vmatpush1.bf16.msra.mxu0 %v2720_v38  ;;  %1942 = vmatprep.mubr.f32.mxu0 %v3180_v0  ;;  %v1453_v0 = vld [vmem:[#allocation10 + $0x7d0] sm:$0xff] }
 0x2aa   : > { %2723 = vmatprep.subr.bf16.mxu0 %v2722_v39  ;;  %v2736_v3 = vpack.c.bf16 %v1453_v0, %v1447_v63  ;;  %v2878_v38 = vld [vmem:[%s3476_s28 + $0x8] sm:$0xff]  ;;  %s3058_s28 = sshll.u32 %s3182_s19, 4  ;;  %s3059_s28 = int_to_ptr.vmem [resolvable:$false] %s3058_s28 }
 0x2ab   : > { %s3060_s8 = scalar_lea.vmem %s3059_s28, 768  ;;  %p3061_p6 = scmp.lt.s32.totalorder %s3604_s2, %s3059_s28 }
 0x2ac   : > { %p3062_p7 = scmp.lt.s32.totalorder %s3060_s8, %s3054_s20 }
 0x2ad   : > { %2725 = vmatpush1.bf16.msra.mxu0 %v2724_v49 }
 0x2ae   : > { %2727 = vmatprep.subr.bf16.mxu0 %v2726_v51  ;;  %p3063_p8 = por %p3062_p7, %p3061_p6 }
 0x2b0   : > { %p3064_p5 = pnand %p3063_p8, %p3057_p10 }
 0x2b1   : > { %2729 = vmatpush1.bf16.msra.mxu0 %v2728_v61 }
 0x2b2   : > { %2731 = vmatprep.subr.bf16.mxu0 %v2730_v56 }
 0x2b5   : > { %2733 = vmatpush1.bf16.msra.mxu0 %v2732_v42 }
 0x2b6   : > { %2735 = vmatprep.subr.bf16.mxu0 %v2734_v50 }
 0x2b9   : > { %2737 = vmatpush1.bf16.msra.mxu0 %v2736_v3 }
 0x2ba   : > { %2739 = vmatprep.subr.bf16.mxu0 %v2738_v4 }
 0x2bd   : > { %2741 = vmatpush1.bf16.msra.mxu0 %v2740_v8 }
 0x2be   : > { %2743 = vmatprep.subr.bf16.mxu0 %v2742_v9 }
 0x2c1   : > { %2745 = vmatpush1.bf16.msra.mxu0 %v2744_v15 }
 0x2c2   : > { %2747 = vmatprep.subr.bf16.mxu0 %v2746_v16 }
 0x2c5   : > { %2749 = vmatpush1.bf16.msra.mxu0 %v2748_v20 }
 0x2c8   : > { %1943 = vmatmul.mubr.f32.vlgmr.msra.gmra.mrb[12].mxu0 %v3559_v23  ;;  %v1500_v23 = vrot.slane %v3583_v27, %v1499_v28 }
 0x33b   : > { %v1660_v32 = vpop.f32.mrb[10].mxu0  ;;  %v1802_v17 = vpop.f32.mrb[6].mxu1 }
 0x33c   : > { %v2754_v33 = vadd.f32 %v1660_v32, %v1496_v43  ;;  %v2756_v34 = vadd.f32 %v1802_v17, %v1504_v11  ;;  %v1662_v35 = vpop.f32.mrb[11].mxu0  ;;  %v1804_v37 = vpop.f32.mrb[7].mxu1 }
 0x33d   : > { %v2755_v25 = vadd.f32 %v1662_v35, %v1500_v23  ;;  %v2757_v40 = vadd.f32 %v1804_v37, %v1508_v30 }
 0x33e   : > { %v1949_v36 = vadd.f32 %v2876_v41, %v2754_v33  ;;  %v1951_v45 = vadd.f32 %v2877_v44, %v2756_v34 }
 0x33f   : > { %v1950_v39 = vadd.f32 %v2878_v38, %v2755_v25  ;;  %v1955_v47 = vadd.f32 %v2879_v46, %v2757_v40 }
 0x340   : > { %1952 = vst [vmem:[%s392_s23] sm:$0xff] %v1949_v36  ;;  %1954 = vst.msk [vmem:[%s392_s23 + $0x10] sm:$0xff] %vm505_vm1, %v1951_v45 }
 0x341   : > { %1953 = vst [vmem:[%s392_s23 + $0x8] sm:$0xff] %v1950_v39  ;;  %1958 = vst [vmem:[%s3608_s21] sm:$0xff] %v1955_v47 }
 0x342   : > { %3067 = shalt.err (!%p3064_p5)
}
 0x343   : > { %s3068_s10 = scalar_lea.hbm %s3602_s15, 384  ;;  %s3072_s16 = scalar_lea.hbm %s3698_s6, 768 }
 0x344   : > { %p3069_p11 = scmp.ne.s32.totalorder %s3602_s15, %s3068_s10  ;;  %p3073_p12 = scmp.lt.u32.totalorder %s3602_s15, %s3698_s6 }
 0x345   : > { %p3074_p3 = scmp.lt.u32.totalorder %s3072_s16, %s3068_s10  ;;  %p3076_p0 = scmp.lt.u32.totalorder %s3068_s10, %s3602_s15 }
 0x346   : > { %p3070_p1 = pnand %p3069_p11, %p3727_p2 }
 0x347   : > { %p3075_p13 = por %p3074_p3, %p3073_p12 }
 0x348   : > { %p3071_p9 = pneg %p3070_p1 }
 0x349   : > { %p3077_p4 = por %p3076_p0, %p3075_p13 }
 0x34b   : > { %p3078_p10 = pnand %p3077_p4, %p3071_p9 }
 0x34d   : > { %3081 = shalt.err (!%p3078_p10)
}
 0x34e   : > { %2793 = dma.vmem_to_hbm [thread:$0]  (%p3727_p2), %s3604_s2, 384, %s3602_s15, %s1962_s9   ;;  %v1511_v62 = vsub.s32 4, %v3579_v22  ;;  %v1515_v48 = vsub.s32 5, %v3579_v22  ;;  %v2880_v61 = vld [vmem:[%s3484_s13 + $0x8] sm:$0xff]  ;;  %v2881_v57 = vld [vmem:[%s3484_s13 + $0x10] sm:$0xff] }
 0x34f   : > { %s1995_s20 = sshll.u32 %s3608_s21, 4  ;;  %s3645_s9 = scalar_lea.hbm %s3699_s7, %s2771_s22  ;;  %s3647_s20 = int_to_ptr.vmem [resolvable:$true] %s1995_s20 }
 0x350   : > { %v1512_v49 = vrot.slane %v3583_v27, %v1511_v62  ;;  %v1516_v51 = vrot.slane %v3583_v27, %v1515_v48  ;;  %s1967_s28 = scalar_lea.sflag [#allocation15], %s3469_s0  ;;  %s3082_s8 = scalar_lea.vmem %s3647_s20, 384 }
 0x351   : > { %p3083_p6 = scmp.ne.s32.totalorder %s3647_s20, %s3082_s8  ;;  %s3183_s30 = smov [#allocation14]  }
 0x352   : > { %s3086_s13 = sshll.u32 %s3183_s30, 4  ;;  %s3087_s13 = int_to_ptr.vmem [resolvable:$false] %s3086_s13 }
 0x353   : > { %p3084_p7 = pnand %p3083_p6, %p3727_p2  ;;  %s3088_s10 = scalar_lea.vmem %s3087_s13, 768 }
 0x354   : > { %p3089_p5 = scmp.lt.s32.totalorder %s3647_s20, %s3087_s13  ;;  %p3090_p11 = scmp.lt.s32.totalorder %s3088_s10, %s3082_s8 }
 0x355   : > { %p3085_p8 = pneg %p3084_p7 }
 0x356   : > { %p3091_p1 = por %p3090_p11, %p3089_p5 }
 0x358   : > { %p3092_p9 = pnand %p3091_p1, %p3085_p8 }
 0x39b   : > { %v1944_v52 = vpop.f32.mrb[12].mxu0 }
 0x39c   : > { %v2758_v53 = vadd.f32 %v1944_v52, %v1512_v49  ;;  %v1946_v54 = vpop.f32.mrb[13].mxu0 }
 0x39d   : > { %v2759_v55 = vadd.f32 %v1946_v54, %v1516_v51 }
 0x39e   : > { %v1956_v56 = vadd.f32 %v2880_v61, %v2758_v53 }
 0x39f   : > { %v1957_v58 = vadd.f32 %v2881_v57, %v2759_v55 }
 0x3a0   : > { %1959 = vst [vmem:[%s3608_s21 + $0x8] sm:$0xff] %v1956_v56 }
 0x3a1   : > { %1960 = vst.msk [vmem:[%s3608_s21 + $0x10] sm:$0xff] %vm505_vm1, %v1957_v58 }
 0x3a2   : > { %3095 = shalt.err (!%p3092_p9)
}
 0x3a3   : > { %s3096_s0 = scalar_lea.hbm %s3645_s9, 384  ;;  %s3100_s17 = scalar_lea.hbm %s3699_s7, 768 }
 0x3a4   : > { %p3097_p12 = scmp.ne.s32.totalorder %s3645_s9, %s3096_s0  ;;  %p3101_p0 = scmp.lt.u32.totalorder %s3645_s9, %s3699_s7 }
 0x3a5   : > { %p3102_p4 = scmp.lt.u32.totalorder %s3100_s17, %s3096_s0  ;;  %p3104_p6 = scmp.lt.u32.totalorder %s3096_s0, %s3645_s9 }
 0x3a6   : > { %p3098_p3 = pnand %p3097_p12, %p3727_p2 }
 0x3a7   : > { %p3103_p10 = por %p3102_p4, %p3101_p0 }
 0x3a8   : > { %p3099_p13 = pneg %p3098_p3 }
 0x3a9   : > { %p3105_p7 = por %p3104_p6, %p3103_p10 }
 0x3ab   : > { %p3106_p8 = pnand %p3105_p7, %p3099_p13 }
 0x3ad   : > { %3109 = shalt.err (!%p3106_p8)
}
 0x3ae   : > { %2794 = dma.vmem_to_hbm [thread:$0]  (%p3727_p2), %s3647_s20, 384, %s3645_s9, %s1967_s28  }
 0x3af PF: > { %s2007_s18 = sand.u32 1, %s3156_s24   ;;  %p3728_p5 = scmp.ne.s32.totalorder %s3714_s14, 0 }
 0x3b0   : > { %p3729_p11 = scmp.ge.s32.totalorder %s3168_s27, 2  ;;  %s2008_s19 = scalar_lea.sflag [#allocation4], %s2007_s18 }
 0x3b2   : > { %p2818_p1 = pnand %p3729_p11, %p3728_p5 }
 0x3b4   : > { %3147 = dma.done.wait (!%p2818_p1), %s2008_s19, 384  }
 0x3b5   : > { %3149 = vsyncadd (!%p2818_p1), %s2008_s19, 4294966912  ;;  %s2017_s2 = scalar_lea.sflag [#allocation15], %s2007_s18 }
 0x3b6   : > { %3151 = dma.done.wait (!%p2818_p1), %s2017_s2, 384  }
 0x3b7   : > { %3153 = vsyncadd (!%p2818_p1), %s2017_s2, 4294966912  ;;  %p29_p2 = scmp.ge.s32.totalorder %s3364_s11, 4   ;;  %s3730_s24 = smov %s3160_s25 }
 0x3b8   : > { %s3731_s25 = smov %s3164_s26  ;;  %s3732_s26 = smov %s3375_s29 }
 0x3b9   : > { %s3733_s27 = smov %s3364_s11  ;;  %31 = sbr.rel (!%p29_p2) target bundleno = 14 (0xe), region = 135 }
 0x3c0   :  { %2022 = vsyncpa [#allocation3], 1 }
 0x3c1   :  { %2024 = vsyncpa [#allocation3 + $0x1], 1 }
 0x3c2   :  { %2025 = vsyncpa [#allocation6], 1 }
 0x3c3   :  { %2027 = vsyncpa [#allocation6 + $0x1], 1 }
 0x3c4   :  { %2028 = vsyncpa [#allocation9], 1 }
 0x3c5   :  { %2029 = vsyncpa [#allocation12], 1 }
 0x3c6   :  { %2030 = vsyncpa [#allocation4], 1 }
 0x3c7   :  { %2032 = vsyncpa [#allocation4 + $0x1], 1 }
 0x3c8   :  { %2033 = vsyncpa [#allocation15], 1 }
 0x3c9   :  { %2035 = vsyncpa [#allocation15 + $0x1], 1 }

</bundles_post_ra>
